<compile_context>
chip_gen: v6e
topology: v6e:2x2x1
jax: 0.10.0
libtpu: 0.0.40
codegen_flags: <defaults>
</compile_context>

<pallas_src>
import functools

import jax
import jax.numpy as jnp
from jax.experimental import pallas as pl
from jax.experimental.pallas import tpu as pltpu

BN_EPS = 1e-5
LANE = 128
SUBLANE = 8


def _round_up(v, m):
    return (v + m - 1) // m * m


# --------------------------------------------------------------------------
# Fused kernel: input MLP -> 3 GIN layers -> mean pool -> prediction linears
# --------------------------------------------------------------------------
def fused_gin_kernel(x_ref, a_ref, p_ref,
                     w0a_ref, b0a_ref, w0b_ref, b0b_ref,
                     gw1_ref, gb1_ref, gw2_ref, gb2_ref,
                     pw_ref, pb_ref,
                     node_ref, pool_ref):
    f32 = jnp.float32

    # Input MLP (bn1_1 folded into w0a / b0a).
    h = jnp.dot(x_ref[...], w0a_ref[...], preferred_element_type=f32) + b0a_ref[...]
    h = jnp.maximum(h, 0.0)
    h0 = jnp.dot(h, w0b_ref[...], preferred_element_type=f32) + b0b_ref[...]

    a = a_ref[...]  # A' = A + I  (mean aggregation + GIN self-term)

    def gin(hin, layer):
        s = jnp.dot(a, hin, preferred_element_type=f32)
        t = jnp.maximum(
            jnp.dot(s, gw1_ref[layer], preferred_element_type=f32) + gb1_ref[layer],
            0.0)
        u = jnp.dot(t, gw2_ref[layer], preferred_element_type=f32) + gb2_ref[layer]
        return jnp.maximum(u, 0.0)          # bn_k folded into gw2 / gb2

    h1 = gin(h0, 0)
    h2 = gin(h1, 1)
    h3 = gin(h2, 2)

    node_sum = h1 + h2 + h3
    node_ref[...] = node_sum

    # Per-graph mean pool + prediction linears, accumulated over the 4 layers
    # (hidden_rep aliasing: layer 1 sees h1+h2+h3).
    p = p_ref[...]
    out = jnp.zeros(pool_ref.shape, f32)
    for layer, hl in enumerate((h0, node_sum, h2, h3)):
        g = jnp.dot(p, hl, preferred_element_type=f32)
        out = out + jnp.dot(g, pw_ref[layer], preferred_element_type=f32) + pb_ref[layer]
    pool_ref[...] = out


# --------------------------------------------------------------------------
# One-time glue: fold eval BN into linears, pad everything to lane width
# --------------------------------------------------------------------------
def fold_and_pad_params(params, in_chnl, hid_chnl):
    Cp = _round_up(in_chnl, LANE)
    Hp = _round_up(hid_chnl, LANE)

    def pad2(w, r, c):
        return jnp.zeros((r, c), jnp.float32).at[:w.shape[0], :w.shape[1]].set(w)

    def fold_bn(w, b, g, beta, m, v):
        s = g / jnp.sqrt(v + BN_EPS)                  # [1, H]
        return w * s, (b - m) * s + beta

    # lin1_1 + bn1_1 folded; lin1_2 plain.
    w0a, b0a = fold_bn(params["lin1_1_w"], params["lin1_1_b"],
                       params["bn1_1_g"], params["bn1_1_b"],
                       params["bn1_1_m"], params["bn1_1_v"])
    prep = {
        "w0a": pad2(w0a, Cp, Hp), "b0a": pad2(b0a, 1, Hp),
        "w0b": pad2(params["lin1_2_w"], Hp, Hp),
        "b0b": pad2(params["lin1_2_b"], 1, Hp),
    }

    gw1, gb1, gw2, gb2 = [], [], [], []
    for name in ("gin1", "gin2", "gin3"):
        gp = params[name]
        w2f, b2f = fold_bn(gp["w2"], gp["b2"],
                           gp["bn_g"], gp["bn_b"], gp["bn_m"], gp["bn_v"])
        gw1.append(pad2(gp["w1"], Hp, Hp))
        gb1.append(pad2(gp["b1"], 1, Hp))
        gw2.append(pad2(w2f, Hp, Hp))
        gb2.append(pad2(b2f, 1, Hp))
    prep["gw1"] = jnp.stack(gw1)            # [3, Hp, Hp]
    prep["gb1"] = jnp.stack(gb1)            # [3, 1, Hp]
    prep["gw2"] = jnp.stack(gw2)
    prep["gb2"] = jnp.stack(gb2)

    prep["pw"] = jnp.stack([pad2(params["pred_w"][l], Hp, Hp) for l in range(4)])
    prep["pb"] = jnp.stack([pad2(params["pred_b"][l].reshape(1, -1), 1, Hp)
                            for l in range(4)])
    return prep


# --------------------------------------------------------------------------
# Full forward pass (jitted end-to-end)
# --------------------------------------------------------------------------
@functools.partial(jax.jit, static_argnames=("num_graphs", "hid_chnl"))
def gin_net_forward(x, edge_index, batch, prep, *, num_graphs, hid_chnl):
    N, C = x.shape
    Np = _round_up(N, LANE)                 # lane-dense columns of A / P
    Gp = _round_up(num_graphs, SUBLANE)
    Cp = prep["w0a"].shape[0]
    Hp = prep["w0a"].shape[1]

    x_p = jnp.zeros((Np, Cp), jnp.float32).at[:N, :C].set(x)

    # Dense mean-aggregation matrix with the GIN self term folded in:
    # A'[i, j] = 1/deg_in(i) for edge j->i, plus identity.
    src, dst = edge_index[0], edge_index[1]
    adj = jnp.zeros((Np, Np), jnp.float32).at[dst, src].add(1.0)
    deg = adj.sum(axis=1, keepdims=True)
    a = adj / jnp.where(deg > 0, deg, 1.0) + jnp.eye(Np, dtype=jnp.float32)

    # Per-graph mean-pool matrix P[g, i] = 1/|V_g| if batch[i] == g.
    # Padded nodes get an out-of-range graph id -> all-zero one_hot row.
    node_valid = jnp.arange(Np) < N
    batch_p = jnp.where(node_valid, jnp.pad(batch, (0, Np - N)), Gp)
    onehot = jax.nn.one_hot(batch_p, Gp, dtype=jnp.float32)      # [Np, Gp]
    counts = onehot.sum(axis=0)
    pool_mat = (onehot / jnp.where(counts > 0, counts, 1.0)).T   # [Gp, Np]

    node_p, pool_p = pl.pallas_call(
        fused_gin_kernel,
        out_shape=(jax.ShapeDtypeStruct((Np, Hp), jnp.float32),
                   jax.ShapeDtypeStruct((Gp, Hp), jnp.float32)),
        compiler_params=pltpu.CompilerParams(vmem_limit_bytes=32 * 1024 * 1024),
    )(x_p, a, pool_mat,
      prep["w0a"], prep["b0a"], prep["w0b"], prep["b0b"],
      prep["gw1"], prep["gb1"], prep["gw2"], prep["gb2"],
      prep["pw"], prep["pb"])

    node_pool_over_layer = node_p[:N, :hid_chnl]
    pool_over_layer = pool_p[:num_graphs, :hid_chnl]
    return node_pool_over_layer, pool_over_layer


# --------------------------------------------------------------------------
# Deterministic parameter initialization (mirrors the PyTorch module)
# --------------------------------------------------------------------------
def make_params(key, in_chnl, hid_chnl):
    keys = iter(jax.random.split(key, 32))

    def lin(fan_in, fan_out):
        kw, kb = jax.random.split(next(keys))
        w = jax.random.normal(kw, (fan_in, fan_out), jnp.float32) * 0.1
        b = jax.random.normal(kb, (1, fan_out), jnp.float32) * 0.1
        return w, b

    def bn(c):
        kg, kb, km, kv = jax.random.split(next(keys), 4)
        return {
            "g": 1.0 + 0.1 * jax.random.normal(kg, (1, c), jnp.float32),
            "b": 0.1 * jax.random.normal(kb, (1, c), jnp.float32),
            "m": 0.1 * jax.random.normal(km, (1, c), jnp.float32),
            "v": jax.random.uniform(kv, (1, c), jnp.float32, 0.5, 1.5),
        }

    def gin_block(c):
        w1, b1 = lin(c, c)
        w2, b2 = lin(c, c)
        bnp = bn(c)
        return {"w1": w1, "b1": b1, "w2": w2, "b2": b2,
                "bn_g": bnp["g"], "bn_b": bnp["b"],
                "bn_m": bnp["m"], "bn_v": bnp["v"]}

    p = {}
    p["lin1_1_w"], p["lin1_1_b"] = lin(in_chnl, hid_chnl)
    bn11 = bn(hid_chnl)
    p["bn1_1_g"], p["bn1_1_b"], p["bn1_1_m"], p["bn1_1_v"] = (
        bn11["g"], bn11["b"], bn11["m"], bn11["v"])
    p["lin1_2_w"], p["lin1_2_b"] = lin(hid_chnl, hid_chnl)
    p["gin1"] = gin_block(hid_chnl)
    p["gin2"] = gin_block(hid_chnl)
    p["gin3"] = gin_block(hid_chnl)
    pred_w, pred_b = [], []
    for _ in range(4):
        w, b = lin(hid_chnl, hid_chnl)
        pred_w.append(w)
        pred_b.append(b[0])     # stored as [H]
    p["pred_w"], p["pred_b"] = pred_w, pred_b
    return p


# --------------------------------------------------------------------------
if __name__ == "__main__":
    N, IN_CHNL, HID_CHNL, NUM_GRAPHS, E = 16, 8, 32, 2, 32

    key = jax.random.PRNGKey(0)
    kx, ke, kb, kp = jax.random.split(key, 4)

    x = jax.random.normal(kx, (N, IN_CHNL), jnp.float32)
    edge_index = jax.random.randint(ke, (2, E), 0, N, dtype=jnp.int32)
    batch = jnp.sort(jax.random.randint(kb, (N,), 0, NUM_GRAPHS, dtype=jnp.int32))
    params = make_params(kp, IN_CHNL, HID_CHNL)

    # One-time prep (BN folding + padding) hoisted out of the per-call path.
    prep = fold_and_pad_params(params, IN_CHNL, HID_CHNL)

    node_pool_over_layer, pool_over_layer = gin_net_forward(
        x, edge_index, batch, prep, num_graphs=NUM_GRAPHS, hid_chnl=HID_CHNL)
    jax.block_until_ready((node_pool_over_layer, pool_over_layer))

    assert node_pool_over_layer.shape == (N, HID_CHNL)
    assert pool_over_layer.shape == (NUM_GRAPHS, HID_CHNL)
    print("KERNEL_OK")
</pallas_src>

<mosaic_0001>
module attributes {stable_mosaic.version = 11 : i64} {
  func.func private @main(%arg0: i32) attributes {dimension_semantics = [#tpu.dimension_semantics<core_parallel>], iteration_bounds = array<i64: 2>, tpu.core_type = #tpu.core_type<sc_scalar_subcore>, window_params = []} {
    return
  }
}

module attributes {stable_mosaic.version = 11 : i64} {
  func.func private @main(%arg0: i32) attributes {dimension_semantics = [#tpu.dimension_semantics<core_parallel>], iteration_bounds = array<i64: 2>, tpu.core_type = #tpu.core_type<sc_scalar_subcore>, window_params = []} {
    return
  }
}

module attributes {stable_mosaic.version = 11 : i64} {
  func.func @fused_gin_kernel(%arg0: memref<128x128xf32, #tpu.memory_space<vmem>>, %arg1: memref<128x128xf32, #tpu.memory_space<vmem>>, %arg2: memref<8x128xf32, #tpu.memory_space<vmem>>, %arg3: memref<128x128xf32, #tpu.memory_space<vmem>>, %arg4: memref<1x128xf32, #tpu.memory_space<vmem>>, %arg5: memref<128x128xf32, #tpu.memory_space<vmem>>, %arg6: memref<1x128xf32, #tpu.memory_space<vmem>>, %arg7: memref<3x128x128xf32, #tpu.memory_space<vmem>>, %arg8: memref<3x1x128xf32, #tpu.memory_space<vmem>>, %arg9: memref<3x128x128xf32, #tpu.memory_space<vmem>>, %arg10: memref<3x1x128xf32, #tpu.memory_space<vmem>>, %arg11: memref<4x128x128xf32, #tpu.memory_space<vmem>>, %arg12: memref<4x1x128xf32, #tpu.memory_space<vmem>>, %arg13: memref<128x128xf32, #tpu.memory_space<vmem>>, %arg14: memref<8x128xf32, #tpu.memory_space<vmem>>) attributes {dimension_semantics = [], scalar_prefetch = 0 : i64, scratch_operands = 0 : i64, tpu.core_type = #tpu.core_type<tc>} {
    %c0 = arith.constant 0 : index
    %c0_0 = arith.constant 0 : index
    %0 = vector.load %arg0[%c0, %c0_0] : memref<128x128xf32, #tpu.memory_space<vmem>>, vector<128x128xf32>
    %c0_1 = arith.constant 0 : index
    %c0_2 = arith.constant 0 : index
    %1 = vector.load %arg3[%c0_1, %c0_2] : memref<128x128xf32, #tpu.memory_space<vmem>>, vector<128x128xf32>
    %cst = arith.constant dense<0.000000e+00> : vector<128x128xf32>
    %2 = tpu.matmul %0, %1, %cst {dimension_numbers = #tpu.dot_dimension_numbers<[1], [0], [0], [1], [0, 0, 1, 1], [], []>} : vector<128x128xf32>, vector<128x128xf32>, vector<128x128xf32> -> vector<128x128xf32>
    %c0_3 = arith.constant 0 : index
    %c0_4 = arith.constant 0 : index
    %3 = vector.load %arg4[%c0_3, %c0_4] : memref<1x128xf32, #tpu.memory_space<vmem>>, vector<1x128xf32>
    %4 = vector.broadcast %3 : vector<1x128xf32> to vector<128x128xf32>
    %5 = arith.addf %2, %4 : vector<128x128xf32>
    %cst_5 = arith.constant 0.000000e+00 : f32
    %6 = vector.broadcast %cst_5 : f32 to vector<128x128xf32>
    %7 = arith.maximumf %5, %6 : vector<128x128xf32>
    %c0_6 = arith.constant 0 : index
    %c0_7 = arith.constant 0 : index
    %8 = vector.load %arg5[%c0_6, %c0_7] : memref<128x128xf32, #tpu.memory_space<vmem>>, vector<128x128xf32>
    %cst_8 = arith.constant dense<0.000000e+00> : vector<128x128xf32>
    %9 = tpu.matmul %7, %8, %cst_8 {dimension_numbers = #tpu.dot_dimension_numbers<[1], [0], [0], [1], [0, 0, 1, 1], [], []>} : vector<128x128xf32>, vector<128x128xf32>, vector<128x128xf32> -> vector<128x128xf32>
    %c0_9 = arith.constant 0 : index
    %c0_10 = arith.constant 0 : index
    %10 = vector.load %arg6[%c0_9, %c0_10] : memref<1x128xf32, #tpu.memory_space<vmem>>, vector<1x128xf32>
    %11 = vector.broadcast %10 : vector<1x128xf32> to vector<128x128xf32>
    %12 = arith.addf %9, %11 : vector<128x128xf32>
    %c0_11 = arith.constant 0 : index
    %c0_12 = arith.constant 0 : index
    %13 = vector.load %arg1[%c0_11, %c0_12] : memref<128x128xf32, #tpu.memory_space<vmem>>, vector<128x128xf32>
    %cst_13 = arith.constant dense<0.000000e+00> : vector<128x128xf32>
    %14 = tpu.matmul %13, %12, %cst_13 {dimension_numbers = #tpu.dot_dimension_numbers<[1], [0], [0], [1], [0, 0, 1, 1], [], []>} : vector<128x128xf32>, vector<128x128xf32>, vector<128x128xf32> -> vector<128x128xf32>
    %c0_14 = arith.constant 0 : index
    %c0_15 = arith.constant 0 : index
    %c0_16 = arith.constant 0 : index
    %15 = vector.load %arg7[%c0_14, %c0_15, %c0_16] : memref<3x128x128xf32, #tpu.memory_space<vmem>>, vector<1x128x128xf32>
    %16 = vector.shape_cast %15 : vector<1x128x128xf32> to vector<128x128xf32>
    %cst_17 = arith.constant dense<0.000000e+00> : vector<128x128xf32>
    %17 = tpu.matmul %14, %16, %cst_17 {dimension_numbers = #tpu.dot_dimension_numbers<[1], [0], [0], [1], [0, 0, 1, 1], [], []>} : vector<128x128xf32>, vector<128x128xf32>, vector<128x128xf32> -> vector<128x128xf32>
    %c0_18 = arith.constant 0 : index
    %c0_19 = arith.constant 0 : index
    %c0_20 = arith.constant 0 : index
    %18 = vector.load %arg8[%c0_18, %c0_19, %c0_20] : memref<3x1x128xf32, #tpu.memory_space<vmem>>, vector<1x1x128xf32>
    %19 = vector.shape_cast %18 : vector<1x1x128xf32> to vector<1x128xf32>
    %20 = vector.broadcast %19 : vector<1x128xf32> to vector<128x128xf32>
    %21 = arith.addf %17, %20 : vector<128x128xf32>
    %cst_21 = arith.constant 0.000000e+00 : f32
    %22 = vector.broadcast %cst_21 : f32 to vector<128x128xf32>
    %23 = arith.maximumf %21, %22 : vector<128x128xf32>
    %c0_22 = arith.constant 0 : index
    %c0_23 = arith.constant 0 : index
    %c0_24 = arith.constant 0 : index
    %24 = vector.load %arg9[%c0_22, %c0_23, %c0_24] : memref<3x128x128xf32, #tpu.memory_space<vmem>>, vector<1x128x128xf32>
    %25 = vector.shape_cast %24 : vector<1x128x128xf32> to vector<128x128xf32>
    %cst_25 = arith.constant dense<0.000000e+00> : vector<128x128xf32>
    %26 = tpu.matmul %23, %25, %cst_25 {dimension_numbers = #tpu.dot_dimension_numbers<[1], [0], [0], [1], [0, 0, 1, 1], [], []>} : vector<128x128xf32>, vector<128x128xf32>, vector<128x128xf32> -> vector<128x128xf32>
    %c0_26 = arith.constant 0 : index
    %c0_27 = arith.constant 0 : index
    %c0_28 = arith.constant 0 : index
    %27 = vector.load %arg10[%c0_26, %c0_27, %c0_28] : memref<3x1x128xf32, #tpu.memory_space<vmem>>, vector<1x1x128xf32>
    %28 = vector.shape_cast %27 : vector<1x1x128xf32> to vector<1x128xf32>
    %29 = vector.broadcast %28 : vector<1x128xf32> to vector<128x128xf32>
    %30 = arith.addf %26, %29 : vector<128x128xf32>
    %cst_29 = arith.constant 0.000000e+00 : f32
    %31 = vector.broadcast %cst_29 : f32 to vector<128x128xf32>
    %32 = arith.maximumf %30, %31 : vector<128x128xf32>
    %cst_30 = arith.constant dense<0.000000e+00> : vector<128x128xf32>
    %33 = tpu.matmul %13, %32, %cst_30 {dimension_numbers = #tpu.dot_dimension_numbers<[1], [0], [0], [1], [0, 0, 1, 1], [], []>} : vector<128x128xf32>, vector<128x128xf32>, vector<128x128xf32> -> vector<128x128xf32>
    %c1 = arith.constant 1 : index
    %c0_31 = arith.constant 0 : index
    %c0_32 = arith.constant 0 : index
    %34 = vector.load %arg7[%c1, %c0_31, %c0_32] : memref<3x128x128xf32, #tpu.memory_space<vmem>>, vector<1x128x128xf32>
    %35 = vector.shape_cast %34 : vector<1x128x128xf32> to vector<128x128xf32>
    %cst_33 = arith.constant dense<0.000000e+00> : vector<128x128xf32>
    %36 = tpu.matmul %33, %35, %cst_33 {dimension_numbers = #tpu.dot_dimension_numbers<[1], [0], [0], [1], [0, 0, 1, 1], [], []>} : vector<128x128xf32>, vector<128x128xf32>, vector<128x128xf32> -> vector<128x128xf32>
    %c1_34 = arith.constant 1 : index
    %c0_35 = arith.constant 0 : index
    %c0_36 = arith.constant 0 : index
    %37 = vector.load %arg8[%c1_34, %c0_35, %c0_36] : memref<3x1x128xf32, #tpu.memory_space<vmem>>, vector<1x1x128xf32>
    %38 = vector.shape_cast %37 : vector<1x1x128xf32> to vector<1x128xf32>
    %39 = vector.broadcast %38 : vector<1x128xf32> to vector<128x128xf32>
    %40 = arith.addf %36, %39 : vector<128x128xf32>
    %cst_37 = arith.constant 0.000000e+00 : f32
    %41 = vector.broadcast %cst_37 : f32 to vector<128x128xf32>
    %42 = arith.maximumf %40, %41 : vector<128x128xf32>
    %c1_38 = arith.constant 1 : index
    %c0_39 = arith.constant 0 : index
    %c0_40 = arith.constant 0 : index
    %43 = vector.load %arg9[%c1_38, %c0_39, %c0_40] : memref<3x128x128xf32, #tpu.memory_space<vmem>>, vector<1x128x128xf32>
    %44 = vector.shape_cast %43 : vector<1x128x128xf32> to vector<128x128xf32>
    %cst_41 = arith.constant dense<0.000000e+00> : vector<128x128xf32>
    %45 = tpu.matmul %42, %44, %cst_41 {dimension_numbers = #tpu.dot_dimension_numbers<[1], [0], [0], [1], [0, 0, 1, 1], [], []>} : vector<128x128xf32>, vector<128x128xf32>, vector<128x128xf32> -> vector<128x128xf32>
    %c1_42 = arith.constant 1 : index
    %c0_43 = arith.constant 0 : index
    %c0_44 = arith.constant 0 : index
    %46 = vector.load %arg10[%c1_42, %c0_43, %c0_44] : memref<3x1x128xf32, #tpu.memory_space<vmem>>, vector<1x1x128xf32>
    %47 = vector.shape_cast %46 : vector<1x1x128xf32> to vector<1x128xf32>
    %48 = vector.broadcast %47 : vector<1x128xf32> to vector<128x128xf32>
    %49 = arith.addf %45, %48 : vector<128x128xf32>
    %cst_45 = arith.constant 0.000000e+00 : f32
    %50 = vector.broadcast %cst_45 : f32 to vector<128x128xf32>
    %51 = arith.maximumf %49, %50 : vector<128x128xf32>
    %cst_46 = arith.constant dense<0.000000e+00> : vector<128x128xf32>
    %52 = tpu.matmul %13, %51, %cst_46 {dimension_numbers = #tpu.dot_dimension_numbers<[1], [0], [0], [1], [0, 0, 1, 1], [], []>} : vector<128x128xf32>, vector<128x128xf32>, vector<128x128xf32> -> vector<128x128xf32>
    %c2 = arith.constant 2 : index
    %c0_47 = arith.constant 0 : index
    %c0_48 = arith.constant 0 : index
    %53 = vector.load %arg7[%c2, %c0_47, %c0_48] : memref<3x128x128xf32, #tpu.memory_space<vmem>>, vector<1x128x128xf32>
    %54 = vector.shape_cast %53 : vector<1x128x128xf32> to vector<128x128xf32>
    %cst_49 = arith.constant dense<0.000000e+00> : vector<128x128xf32>
    %55 = tpu.matmul %52, %54, %cst_49 {dimension_numbers = #tpu.dot_dimension_numbers<[1], [0], [0], [1], [0, 0, 1, 1], [], []>} : vector<128x128xf32>, vector<128x128xf32>, vector<128x128xf32> -> vector<128x128xf32>
    %c2_50 = arith.constant 2 : index
    %c0_51 = arith.constant 0 : index
    %c0_52 = arith.constant 0 : index
    %56 = vector.load %arg8[%c2_50, %c0_51, %c0_52] : memref<3x1x128xf32, #tpu.memory_space<vmem>>, vector<1x1x128xf32>
    %57 = vector.shape_cast %56 : vector<1x1x128xf32> to vector<1x128xf32>
    %58 = vector.broadcast %57 : vector<1x128xf32> to vector<128x128xf32>
    %59 = arith.addf %55, %58 : vector<128x128xf32>
    %cst_53 = arith.constant 0.000000e+00 : f32
    %60 = vector.broadcast %cst_53 : f32 to vector<128x128xf32>
    %61 = arith.maximumf %59, %60 : vector<128x128xf32>
    %c2_54 = arith.constant 2 : index
    %c0_55 = arith.constant 0 : index
    %c0_56 = arith.constant 0 : index
    %62 = vector.load %arg9[%c2_54, %c0_55, %c0_56] : memref<3x128x128xf32, #tpu.memory_space<vmem>>, vector<1x128x128xf32>
    %63 = vector.shape_cast %62 : vector<1x128x128xf32> to vector<128x128xf32>
    %cst_57 = arith.constant dense<0.000000e+00> : vector<128x128xf32>
    %64 = tpu.matmul %61, %63, %cst_57 {dimension_numbers = #tpu.dot_dimension_numbers<[1], [0], [0], [1], [0, 0, 1, 1], [], []>} : vector<128x128xf32>, vector<128x128xf32>, vector<128x128xf32> -> vector<128x128xf32>
    %c2_58 = arith.constant 2 : index
    %c0_59 = arith.constant 0 : index
    %c0_60 = arith.constant 0 : index
    %65 = vector.load %arg10[%c2_58, %c0_59, %c0_60] : memref<3x1x128xf32, #tpu.memory_space<vmem>>, vector<1x1x128xf32>
    %66 = vector.shape_cast %65 : vector<1x1x128xf32> to vector<1x128xf32>
    %67 = vector.broadcast %66 : vector<1x128xf32> to vector<128x128xf32>
    %68 = arith.addf %64, %67 : vector<128x128xf32>
    %cst_61 = arith.constant 0.000000e+00 : f32
    %69 = vector.broadcast %cst_61 : f32 to vector<128x128xf32>
    %70 = arith.maximumf %68, %69 : vector<128x128xf32>
    %71 = arith.addf %32, %51 : vector<128x128xf32>
    %72 = arith.addf %71, %70 : vector<128x128xf32>
    %c0_62 = arith.constant 0 : index
    %c0_63 = arith.constant 0 : index
    %73 = vector.load %arg13[%c0_62, %c0_63] : memref<128x128xf32, #tpu.memory_space<vmem>>, vector<128x128xf32>
    tpu.vector_store %arg13[%c0_62, %c0_63], %72 {strides = array<i32>} : memref<128x128xf32, #tpu.memory_space<vmem>>, vector<128x128xf32>,
    %c0_64 = arith.constant 0 : index
    %c0_65 = arith.constant 0 : index
    %74 = vector.load %arg2[%c0_64, %c0_65] : memref<8x128xf32, #tpu.memory_space<vmem>>, vector<8x128xf32>
    %cst_66 = arith.constant 0.000000e+00 : f32
    %75 = vector.broadcast %cst_66 : f32 to vector<8x128xf32>
    %cst_67 = arith.constant dense<0.000000e+00> : vector<8x128xf32>
    %76 = tpu.matmul %74, %12, %cst_67 {dimension_numbers = #tpu.dot_dimension_numbers<[1], [0], [0], [1], [0, 0, 1, 1], [], []>} : vector<8x128xf32>, vector<128x128xf32>, vector<8x128xf32> -> vector<8x128xf32>
    %c0_68 = arith.constant 0 : index
    %c0_69 = arith.constant 0 : index
    %c0_70 = arith.constant 0 : index
    %77 = vector.load %arg11[%c0_68, %c0_69, %c0_70] : memref<4x128x128xf32, #tpu.memory_space<vmem>>, vector<1x128x128xf32>
    %78 = vector.shape_cast %77 : vector<1x128x128xf32> to vector<128x128xf32>
    %cst_71 = arith.constant dense<0.000000e+00> : vector<8x128xf32>
    %79 = tpu.matmul %76, %78, %cst_71 {dimension_numbers = #tpu.dot_dimension_numbers<[1], [0], [0], [1], [0, 0, 1, 1], [], []>} : vector<8x128xf32>, vector<128x128xf32>, vector<8x128xf32> -> vector<8x128xf32>
    %80 = arith.addf %75, %79 : vector<8x128xf32>
    %c0_72 = arith.constant 0 : index
    %c0_73 = arith.constant 0 : index
    %c0_74 = arith.constant 0 : index
    %81 = vector.load %arg12[%c0_72, %c0_73, %c0_74] : memref<4x1x128xf32, #tpu.memory_space<vmem>>, vector<1x1x128xf32>
    %82 = vector.shape_cast %81 : vector<1x1x128xf32> to vector<1x128xf32>
    %83 = vector.broadcast %82 : vector<1x128xf32> to vector<8x128xf32>
    %84 = arith.addf %80, %83 : vector<8x128xf32>
    %cst_75 = arith.constant dense<0.000000e+00> : vector<8x128xf32>
    %85 = tpu.matmul %74, %72, %cst_75 {dimension_numbers = #tpu.dot_dimension_numbers<[1], [0], [0], [1], [0, 0, 1, 1], [], []>} : vector<8x128xf32>, vector<128x128xf32>, vector<8x128xf32> -> vector<8x128xf32>
    %c1_76 = arith.constant 1 : index
    %c0_77 = arith.constant 0 : index
    %c0_78 = arith.constant 0 : index
    %86 = vector.load %arg11[%c1_76, %c0_77, %c0_78] : memref<4x128x128xf32, #tpu.memory_space<vmem>>, vector<1x128x128xf32>
    %87 = vector.shape_cast %86 : vector<1x128x128xf32> to vector<128x128xf32>
    %cst_79 = arith.constant dense<0.000000e+00> : vector<8x128xf32>
    %88 = tpu.matmul %85, %87, %cst_79 {dimension_numbers = #tpu.dot_dimension_numbers<[1], [0], [0], [1], [0, 0, 1, 1], [], []>} : vector<8x128xf32>, vector<128x128xf32>, vector<8x128xf32> -> vector<8x128xf32>
    %89 = arith.addf %84, %88 : vector<8x128xf32>
    %c1_80 = arith.constant 1 : index
    %c0_81 = arith.constant 0 : index
    %c0_82 = arith.constant 0 : index
    %90 = vector.load %arg12[%c1_80, %c0_81, %c0_82] : memref<4x1x128xf32, #tpu.memory_space<vmem>>, vector<1x1x128xf32>
    %91 = vector.shape_cast %90 : vector<1x1x128xf32> to vector<1x128xf32>
    %92 = vector.broadcast %91 : vector<1x128xf32> to vector<8x128xf32>
    %93 = arith.addf %89, %92 : vector<8x128xf32>
    %cst_83 = arith.constant dense<0.000000e+00> : vector<8x128xf32>
    %94 = tpu.matmul %74, %51, %cst_83 {dimension_numbers = #tpu.dot_dimension_numbers<[1], [0], [0], [1], [0, 0, 1, 1], [], []>} : vector<8x128xf32>, vector<128x128xf32>, vector<8x128xf32> -> vector<8x128xf32>
    %c2_84 = arith.constant 2 : index
    %c0_85 = arith.constant 0 : index
    %c0_86 = arith.constant 0 : index
    %95 = vector.load %arg11[%c2_84, %c0_85, %c0_86] : memref<4x128x128xf32, #tpu.memory_space<vmem>>, vector<1x128x128xf32>
    %96 = vector.shape_cast %95 : vector<1x128x128xf32> to vector<128x128xf32>
    %cst_87 = arith.constant dense<0.000000e+00> : vector<8x128xf32>
    %97 = tpu.matmul %94, %96, %cst_87 {dimension_numbers = #tpu.dot_dimension_numbers<[1], [0], [0], [1], [0, 0, 1, 1], [], []>} : vector<8x128xf32>, vector<128x128xf32>, vector<8x128xf32> -> vector<8x128xf32>
    %98 = arith.addf %93, %97 : vector<8x128xf32>
    %c2_88 = arith.constant 2 : index
    %c0_89 = arith.constant 0 : index
    %c0_90 = arith.constant 0 : index
    %99 = vector.load %arg12[%c2_88, %c0_89, %c0_90] : memref<4x1x128xf32, #tpu.memory_space<vmem>>, vector<1x1x128xf32>
    %100 = vector.shape_cast %99 : vector<1x1x128xf32> to vector<1x128xf32>
    %101 = vector.broadcast %100 : vector<1x128xf32> to vector<8x128xf32>
    %102 = arith.addf %98, %101 : vector<8x128xf32>
    %cst_91 = arith.constant dense<0.000000e+00> : vector<8x128xf32>
    %103 = tpu.matmul %74, %70, %cst_91 {dimension_numbers = #tpu.dot_dimension_numbers<[1], [0], [0], [1], [0, 0, 1, 1], [], []>} : vector<8x128xf32>, vector<128x128xf32>, vector<8x128xf32> -> vector<8x128xf32>
    %c3 = arith.constant 3 : index
    %c0_92 = arith.constant 0 : index
    %c0_93 = arith.constant 0 : index
    %104 = vector.load %arg11[%c3, %c0_92, %c0_93] : memref<4x128x128xf32, #tpu.memory_space<vmem>>, vector<1x128x128xf32>
    %105 = vector.shape_cast %104 : vector<1x128x128xf32> to vector<128x128xf32>
    %cst_94 = arith.constant dense<0.000000e+00> : vector<8x128xf32>
    %106 = tpu.matmul %103, %105, %cst_94 {dimension_numbers = #tpu.dot_dimension_numbers<[1], [0], [0], [1], [0, 0, 1, 1], [], []>} : vector<8x128xf32>, vector<128x128xf32>, vector<8x128xf32> -> vector<8x128xf32>
    %107 = arith.addf %102, %106 : vector<8x128xf32>
    %c3_95 = arith.constant 3 : index
    %c0_96 = arith.constant 0 : index
    %c0_97 = arith.constant 0 : index
    %108 = vector.load %arg12[%c3_95, %c0_96, %c0_97] : memref<4x1x128xf32, #tpu.memory_space<vmem>>, vector<1x1x128xf32>
    %109 = vector.shape_cast %108 : vector<1x1x128xf32> to vector<1x128xf32>
    %110 = vector.broadcast %109 : vector<1x128xf32> to vector<8x128xf32>
    %111 = arith.addf %107, %110 : vector<8x128xf32>
    %c0_98 = arith.constant 0 : index
    %c0_99 = arith.constant 0 : index
    %112 = vector.load %arg14[%c0_98, %c0_99] : memref<8x128xf32, #tpu.memory_space<vmem>>, vector<8x128xf32>
    tpu.vector_store %arg14[%c0_98, %c0_99], %111 {strides = array<i32>} : memref<8x128xf32, #tpu.memory_space<vmem>>, vector<8x128xf32>,
    return
  }
}

</mosaic_0001>

<bundles_post_ra>
// kernel: gin_net_forward.1
= control target key start
LH: loop header
LB: loop body
LE: loop exit
PB: predicated region body
PF: predicated region fallthrough
CT: control target
= control target key end

     0   :  { %vm4232_vm0 = vmmov 0   ;;  %s5768_s3 = inlined_call_operand.vmem [shape: f32[128,128], index: 3, kind: input, shape index: {}]   ;;  %s5769_s0 = inlined_call_operand.vmem [shape: f32[128,128], index: 0, kind: input, shape index: {}]   ;;  %s5770_s5 = inlined_call_operand.vmem [shape: f32[128,128], index: 5, kind: input, shape index: {}]   ;;  %s5771_s4 = inlined_call_operand.vmem [shape: f32[1,128], index: 4, kind: input, shape index: {}]   ;;  %s5772_s1 = inlined_call_operand.vmem [shape: f32[128,128], index: 1, kind: input, shape index: {}]   ;;  %s5773_s7 = inlined_call_operand.vmem [shape: f32[3,128,128], index: 7, kind: input, shape index: {}]   ;;  %s5774_s6 = inlined_call_operand.vmem [shape: f32[1,128], index: 6, kind: input, shape index: {}]   ;;  %s5775_s9 = inlined_call_operand.vmem [shape: f32[3,128,128], index: 9, kind: input, shape index: {}]   ;;  %s5776_s8 = inlined_call_operand.vmem [shape: f32[3,1,128], index: 8, kind: input, shape index: {}]   ;;  %s5777_s10 = inlined_call_operand.vmem [shape: f32[3,1,128], index: 10, kind: input, shape index: {}]   ;;  %s5778_s2 = inlined_call_operand.vmem [shape: f32[8,128], index: 2, kind: input, shape index: {}]   ;;  %s5779_s11 = inlined_call_operand.vmem [shape: f32[4,128,128], index: 11, kind: input, shape index: {}]   ;;  %s5780_s13 = inlined_call_operand.vmem [shape: f32[128,128], index: 13, kind: output, shape index: {0}]   ;;  %s5781_s12 = inlined_call_operand.vmem [shape: f32[4,1,128], index: 12, kind: input, shape index: {}]   ;;  %s5782_s14 = inlined_call_operand.vmem [shape: f32[8,128], index: 14, kind: output, shape index: {1}]  }
   0x1   :  { %v77_v0 = vld [vmem:[%s5768_s3 + $0x78] sm:$0xff]  ;;  %v76_v1 = vld [vmem:[%s5768_s3 + $0x70] sm:$0xff]  ;;  %v75_v2 = vld [vmem:[%s5768_s3 + $0x68] sm:$0xff] }
   0x2   :  { %3318 = vmatprep.subr.mxu0 %v77_v0  ;;  %v74_v3 = vld [vmem:[%s5768_s3 + $0x60] sm:$0xff]  ;;  %v73_v5 = vld [vmem:[%s5768_s3 + $0x58] sm:$0xff]  ;;  %v72_v6 = vld [vmem:[%s5768_s3 + $0x50] sm:$0xff] }
   0x3   :  { %3319 = vmatpush3.msra.mxu0 %v77_v0  ;;  %v46_v4 = vld [vmem:[%s5769_s0] sm:$0xff]  ;;  %v71_v7 = vld [vmem:[%s5768_s3 + $0x48] sm:$0xff]  ;;  %v261_v8 = vld [vmem:[%s5770_s5 + $0x78] sm:$0xff] }
   0x4   :  { %3320 = vmatprep.subr.mxu0 %v76_v1  ;;  %3350 = vmatprep.mubr.f32.mxu0 %v46_v4  ;;  %v260_v9 = vld [vmem:[%s5770_s5 + $0x70] sm:$0xff]  ;;  %v70_v10 = vld [vmem:[%s5768_s3 + $0x40] sm:$0xff]  ;;  %v259_v11 = vld [vmem:[%s5770_s5 + $0x68] sm:$0xff] }
   0x5   :  { %3321 = vmatpush3.msra.mxu0 %v76_v1  ;;  %3374 = vmatprep.subr.mxu1 %v261_v8  ;;  %v69_v12 = vld [vmem:[%s5768_s3 + $0x38] sm:$0xff]  ;;  %v258_v13 = vld [vmem:[%s5770_s5 + $0x60] sm:$0xff]  ;;  %v68_v14 = vld [vmem:[%s5768_s3 + $0x30] sm:$0xff] }
   0x6   :  { %3322 = vmatprep.subr.mxu0 %v75_v2  ;;  %3375 = vmatpush3.msra.mxu1 %v261_v8  ;;  %v257_v15 = vld [vmem:[%s5770_s5 + $0x58] sm:$0xff]  ;;  %v67_v16 = vld [vmem:[%s5768_s3 + $0x28] sm:$0xff]  ;;  %v256_v17 = vld [vmem:[%s5770_s5 + $0x50] sm:$0xff] }
   0x7   :  { %3323 = vmatpush3.msra.mxu0 %v75_v2  ;;  %3376 = vmatprep.subr.mxu1 %v260_v9  ;;  %v66_v18 = vld [vmem:[%s5768_s3 + $0x20] sm:$0xff]  ;;  %v255_v19 = vld [vmem:[%s5770_s5 + $0x48] sm:$0xff]  ;;  %v65_v20 = vld [vmem:[%s5768_s3 + $0x18] sm:$0xff] }
   0x8   :  { %3324 = vmatprep.subr.mxu0 %v74_v3  ;;  %3377 = vmatpush3.msra.mxu1 %v260_v9  ;;  %v254_v21 = vld [vmem:[%s5770_s5 + $0x40] sm:$0xff]  ;;  %v64_v22 = vld [vmem:[%s5768_s3 + $0x10] sm:$0xff]  ;;  %v253_v23 = vld [vmem:[%s5770_s5 + $0x38] sm:$0xff] }
   0x9   :  { %3325 = vmatpush3.msra.mxu0 %v74_v3  ;;  %3378 = vmatprep.subr.mxu1 %v259_v11  ;;  %v63_v24 = vld [vmem:[%s5768_s3 + $0x8] sm:$0xff]  ;;  %v252_v25 = vld [vmem:[%s5770_s5 + $0x30] sm:$0xff]  ;;  %v62_v26 = vld [vmem:[%s5768_s3] sm:$0xff] }
   0xa   :  { %3326 = vmatprep.subr.mxu0 %v73_v5  ;;  %3379 = vmatpush3.msra.mxu1 %v259_v11  ;;  %v251_v27 = vld [vmem:[%s5770_s5 + $0x28] sm:$0xff]  ;;  %v250_v29 = vld [vmem:[%s5770_s5 + $0x20] sm:$0xff]  ;;  %v48_v30 = vld [vmem:[%s5769_s0 + $0x10] sm:$0xff] }
   0xb   :  { %3327 = vmatpush3.msra.mxu0 %v73_v5  ;;  %3380 = vmatprep.subr.mxu1 %v258_v13  ;;  %v47_v28 = vld [vmem:[%s5769_s0 + $0x8] sm:$0xff]  ;;  %v49_v31 = vld [vmem:[%s5769_s0 + $0x18] sm:$0xff]  ;;  %v50_v32 = vld [vmem:[%s5769_s0 + $0x20] sm:$0xff] }
   0xc   :  { %3328 = vmatprep.subr.mxu0 %v72_v6  ;;  %3381 = vmatpush3.msra.mxu1 %v258_v13  ;;  %v51_v33 = vld [vmem:[%s5769_s0 + $0x28] sm:$0xff]  ;;  %v52_v34 = vld [vmem:[%s5769_s0 + $0x30] sm:$0xff]  ;;  %v53_v35 = vld [vmem:[%s5769_s0 + $0x38] sm:$0xff] }
   0xd   :  { %3329 = vmatpush3.msra.mxu0 %v72_v6  ;;  %3382 = vmatprep.subr.mxu1 %v257_v15  ;;  %v54_v36 = vld [vmem:[%s5769_s0 + $0x40] sm:$0xff]  ;;  %v55_v37 = vld [vmem:[%s5769_s0 + $0x48] sm:$0xff]  ;;  %v56_v38 = vld [vmem:[%s5769_s0 + $0x50] sm:$0xff] }
   0xe   :  { %3330 = vmatprep.subr.mxu0 %v71_v7  ;;  %3383 = vmatpush3.msra.mxu1 %v257_v15  ;;  %v57_v39 = vld [vmem:[%s5769_s0 + $0x58] sm:$0xff]  ;;  %v58_v40 = vld [vmem:[%s5769_s0 + $0x60] sm:$0xff]  ;;  %v59_v41 = vld [vmem:[%s5769_s0 + $0x68] sm:$0xff] }
   0xf   :  { %3331 = vmatpush3.msra.mxu0 %v71_v7  ;;  %3384 = vmatprep.subr.mxu1 %v256_v17  ;;  %v60_v42 = vld [vmem:[%s5769_s0 + $0x70] sm:$0xff]  ;;  %v61_v43 = vld [vmem:[%s5769_s0 + $0x78] sm:$0xff]  ;;  %v247_v46 = vld [vmem:[%s5770_s5 + $0x8] sm:$0xff] }
  0x10   :  { %3332 = vmatprep.subr.mxu0 %v70_v10  ;;  %3385 = vmatpush3.msra.mxu1 %v256_v17  ;;  %v249_v44 = vld [vmem:[%s5770_s5 + $0x18] sm:$0xff]  ;;  %v248_v45 = vld [vmem:[%s5770_s5 + $0x10] sm:$0xff]  ;;  %v246_v47 = vld [vmem:[%s5770_s5] sm:$0xff] }
  0x11   :  { %3333 = vmatpush3.msra.mxu0 %v70_v10  ;;  %3386 = vmatprep.subr.mxu1 %v255_v19  ;;  %v2699_v48 = vld [vmem:[%s5771_s4] ss:$0 sm:$0xff] }
  0x12   :  { %3334 = vmatprep.subr.mxu0 %v69_v12  ;;  %3387 = vmatpush3.msra.mxu1 %v255_v19 }
  0x13   :  { %3335 = vmatpush3.msra.mxu0 %v69_v12  ;;  %3388 = vmatprep.subr.mxu1 %v254_v21 }
  0x14   :  { %3336 = vmatprep.subr.mxu0 %v68_v14  ;;  %3389 = vmatpush3.msra.mxu1 %v254_v21 }
  0x15   :  { %3337 = vmatpush3.msra.mxu0 %v68_v14  ;;  %3390 = vmatprep.subr.mxu1 %v253_v23 }
  0x16   :  { %3338 = vmatprep.subr.mxu0 %v67_v16  ;;  %3391 = vmatpush3.msra.mxu1 %v253_v23 }
  0x17   :  { %3339 = vmatpush3.msra.mxu0 %v67_v16  ;;  %3392 = vmatprep.subr.mxu1 %v252_v25 }
  0x18   :  { %3340 = vmatprep.subr.mxu0 %v66_v18  ;;  %3393 = vmatpush3.msra.mxu1 %v252_v25 }
  0x19   :  { %3341 = vmatpush3.msra.mxu0 %v66_v18  ;;  %3394 = vmatprep.subr.mxu1 %v251_v27 }
  0x1a   :  { %3342 = vmatprep.subr.mxu0 %v65_v20  ;;  %3395 = vmatpush3.msra.mxu1 %v251_v27 }
  0x1b   :  { %3343 = vmatpush3.msra.mxu0 %v65_v20  ;;  %3396 = vmatprep.subr.mxu1 %v250_v29 }
  0x1c   :  { %3344 = vmatprep.subr.mxu0 %v64_v22  ;;  %3397 = vmatpush3.msra.mxu1 %v250_v29 }
  0x1d   :  { %3345 = vmatpush3.msra.mxu0 %v64_v22  ;;  %3398 = vmatprep.subr.mxu1 %v249_v44 }
  0x1e   :  { %3346 = vmatprep.subr.mxu0 %v63_v24  ;;  %3399 = vmatpush3.msra.mxu1 %v249_v44  ;;  %v580_v44 = vld [vmem:[%s5773_s7 + $0x28] sm:$0xff] }
  0x1f   :  { %3347 = vmatpush3.msra.mxu0 %v63_v24  ;;  %3400 = vmatprep.subr.mxu1 %v248_v45 }
  0x20   :  { %3348 = vmatprep.subr.mxu0 %v62_v26  ;;  %3401 = vmatpush3.msra.mxu1 %v248_v45  ;;  %v579_v45 = vld [vmem:[%s5773_s7 + $0x20] sm:$0xff] }
  0x21   :  { %3349 = vmatpush3.msra.mxu0 %v62_v26  ;;  %3402 = vmatprep.subr.mxu1 %v247_v46 }
  0x22   :  { %3351 = vmatmul.mubr.f32.vlgmr.msra.gmra.mxu0 %v47_v28  ;;  %3403 = vmatpush3.msra.mxu1 %v247_v46  ;;  %v578_v46 = vld [vmem:[%s5773_s7 + $0x18] sm:$0xff] }
  0x23   :  { %3353 = vmatprep.mubr.f32.mxu0 %v48_v30  ;;  %3404 = vmatprep.subr.mxu1 %v246_v47 }
  0x24   :  { %3405 = vmatpush3.msra.mxu1 %v246_v47  ;;  %v577_v47 = vld [vmem:[%s5773_s7 + $0x10] sm:$0xff] }
  0x26   :  { %3354 = vmatmul.mubr.f32.gmra.mxu0 %v49_v31 }
  0x27   :  { %3356 = vmatprep.mubr.f32.mxu0 %v50_v32 }
  0x2a   :  { %3357 = vmatmul.mubr.f32.gmra.mxu0 %v51_v33  ;;  %v4458_v33 = vld [vmem:[%s5772_s1] sm:$0xff] }
  0x2b   :  { %3359 = vmatprep.mubr.f32.mxu0 %v52_v34  ;;  %v590_v34 = vld [vmem:[%s5773_s7 + $0x78] sm:$0xff] }
  0x2c   :  { %3486 = vmatprep.subr.mxu1 %v590_v34 }
  0x2e   :  { %3360 = vmatmul.mubr.f32.gmra.mxu0 %v53_v35  ;;  %v589_v35 = vld [vmem:[%s5773_s7 + $0x70] sm:$0xff] }
  0x2f   :  { %3362 = vmatprep.mubr.f32.mxu0 %v54_v36  ;;  %v588_v36 = vld [vmem:[%s5773_s7 + $0x68] sm:$0xff] }
  0x32   :  { %3363 = vmatmul.mubr.f32.gmra.mxu0 %v55_v37  ;;  %v587_v37 = vld [vmem:[%s5773_s7 + $0x60] sm:$0xff] }
  0x33   :  { %3365 = vmatprep.mubr.f32.mxu0 %v56_v38  ;;  %v586_v38 = vld [vmem:[%s5773_s7 + $0x58] sm:$0xff] }
  0x36   :  { %3366 = vmatmul.mubr.f32.gmra.mxu0 %v57_v39  ;;  %v585_v39 = vld [vmem:[%s5773_s7 + $0x50] sm:$0xff] }
  0x37   :  { %3368 = vmatprep.mubr.f32.mxu0 %v58_v40  ;;  %v584_v40 = vld [vmem:[%s5773_s7 + $0x48] sm:$0xff] }
  0x3a   :  { %3369 = vmatmul.mubr.f32.gmra.mxu0 %v59_v41  ;;  %v583_v41 = vld [vmem:[%s5773_s7 + $0x40] sm:$0xff] }
  0x3b   :  { %3371 = vmatprep.mubr.f32.mxu0 %v60_v42  ;;  %v582_v42 = vld [vmem:[%s5773_s7 + $0x38] sm:$0xff] }
  0x3e   :  { %3372 = vmatmul.mubr.f32.gmra.mxu0 %v61_v43  ;;  %v581_v43 = vld [vmem:[%s5773_s7 + $0x30] sm:$0xff] }
  0x3f   :  { %3462 = vmatprep.mubr.f32.mxu0 %v4458_v33 }
  0xe2   :  { %v3352_v49 = vpop.f32.mrf.mxu0 }
  0xe3   :  { %v157_v50 = vadd.f32 %v3352_v49, %v2699_v48 }
  0xe4   :  { %v151_v51 = vpop.f32.mrf.mxu0 }
  0xe5   :  { %v152_v52 = vadd.f32 %v2699_v48, %v151_v51  ;;  %v231_v55 = vmax.f32 %v157_v50, 0.0 }
  0xe6   :  { %v3355_v53 = vpop.f32.mrf.mxu0 }
  0xe7   :  { %v230_v54 = vmax.f32 %v152_v52, 0.0  ;;  %v167_v56 = vadd.f32 %v3355_v53, %v2699_v48 }
  0xe8   :  { %v161_v57 = vpop.f32.mrf.mxu0 }
  0xe9   :  { %v162_v58 = vadd.f32 %v2699_v48, %v161_v57  ;;  %3406 = vmatprep.mubr.f32.mxu1 %v230_v54  ;;  %v233_v61 = vmax.f32 %v167_v56, 0.0 }
  0xea   :  { %v3358_v59 = vpop.f32.mrf.mxu0  ;;  %3407 = vmatmul.mubr.f32.vlgmr.msra.gmra.mxu1 %v231_v55 }
  0xeb   :  { %v232_v60 = vmax.f32 %v162_v58, 0.0  ;;  %v177_v62 = vadd.f32 %v3358_v59, %v2699_v48  ;;  %3487 = vmatpush3.msra.mxu1 %v590_v34  ;;  %v575_v34 = vld [vmem:[%s5773_s7] sm:$0xff] }
  0xec   :  { %v171_v63 = vpop.f32.mrf.mxu0  ;;  %3488 = vmatprep.subr.mxu1 %v589_v35 }
  0xed   :  { %v172_v0 = vadd.f32 %v2699_v48, %v171_v63  ;;  %3409 = vmatprep.mubr.f32.mxu1 %v232_v60  ;;  %v235_v3 = vmax.f32 %v177_v62, 0.0  ;;  %3489 = vmatpush3.msra.mxu1 %v589_v35  ;;  %v2700_v62 = vld [vmem:[%s5774_s6] ss:$0 sm:$0xff]  ;;  %v774_v35 = vld [vmem:[%s5775_s9 + $0x78] sm:$0xff] }
  0xee   :  { %v3361_v1 = vpop.f32.mrf.mxu0  ;;  %3410 = vmatmul.mubr.f32.gmra.mxu1 %v233_v61  ;;  %3490 = vmatprep.subr.mxu1 %v588_v36 }
  0xef   :  { %v234_v2 = vmax.f32 %v172_v0, 0.0  ;;  %v187_v4 = vadd.f32 %v3361_v1, %v2699_v48  ;;  %3491 = vmatpush3.msra.mxu1 %v588_v36  ;;  %v773_v36 = vld [vmem:[%s5775_s9 + $0x70] sm:$0xff] }
  0xf0   :  { %v181_v5 = vpop.f32.mrf.mxu0  ;;  %3492 = vmatprep.subr.mxu1 %v587_v37 }
  0xf1   :  { %v182_v6 = vadd.f32 %v2699_v48, %v181_v5  ;;  %3412 = vmatprep.mubr.f32.mxu1 %v234_v2  ;;  %v237_v9 = vmax.f32 %v187_v4, 0.0  ;;  %3493 = vmatpush3.msra.mxu1 %v587_v37  ;;  %v772_v37 = vld [vmem:[%s5775_s9 + $0x68] sm:$0xff] }
  0xf2   :  { %v3364_v7 = vpop.f32.mrf.mxu0  ;;  %3413 = vmatmul.mubr.f32.gmra.mxu1 %v235_v3  ;;  %3494 = vmatprep.subr.mxu1 %v586_v38 }
  0xf3   :  { %v236_v8 = vmax.f32 %v182_v6, 0.0  ;;  %v197_v10 = vadd.f32 %v3364_v7, %v2699_v48  ;;  %3495 = vmatpush3.msra.mxu1 %v586_v38  ;;  %v771_v38 = vld [vmem:[%s5775_s9 + $0x60] sm:$0xff] }
  0xf4   :  { %v191_v11 = vpop.f32.mrf.mxu0  ;;  %3496 = vmatprep.subr.mxu1 %v585_v39 }
  0xf5   :  { %v192_v12 = vadd.f32 %v2699_v48, %v191_v11  ;;  %3415 = vmatprep.mubr.f32.mxu1 %v236_v8  ;;  %v239_v15 = vmax.f32 %v197_v10, 0.0  ;;  %3497 = vmatpush3.msra.mxu1 %v585_v39  ;;  %v770_v39 = vld [vmem:[%s5775_s9 + $0x58] sm:$0xff] }
  0xf6   :  { %v3367_v13 = vpop.f32.mrf.mxu0  ;;  %3416 = vmatmul.mubr.f32.gmra.mxu1 %v237_v9  ;;  %3498 = vmatprep.subr.mxu1 %v584_v40 }
  0xf7   :  { %v238_v14 = vmax.f32 %v192_v12, 0.0  ;;  %v207_v16 = vadd.f32 %v3367_v13, %v2699_v48  ;;  %3499 = vmatpush3.msra.mxu1 %v584_v40  ;;  %v769_v40 = vld [vmem:[%s5775_s9 + $0x50] sm:$0xff] }
  0xf8   :  { %v201_v17 = vpop.f32.mrf.mxu0  ;;  %3500 = vmatprep.subr.mxu1 %v583_v41 }
  0xf9   :  { %v202_v18 = vadd.f32 %v2699_v48, %v201_v17  ;;  %3418 = vmatprep.mubr.f32.mxu1 %v238_v14  ;;  %v241_v21 = vmax.f32 %v207_v16, 0.0  ;;  %3501 = vmatpush3.msra.mxu1 %v583_v41  ;;  %v4571_v17 = vld [vmem:[%s5772_s1 + $0x8] sm:$0xff] }
  0xfa   :  { %v3370_v19 = vpop.f32.mrf.mxu0  ;;  %3419 = vmatmul.mubr.f32.gmra.mxu1 %v239_v15  ;;  %3502 = vmatprep.subr.mxu1 %v582_v42  ;;  %v768_v41 = vld [vmem:[%s5775_s9 + $0x48] sm:$0xff] }
  0xfb   :  { %v240_v20 = vmax.f32 %v202_v18, 0.0  ;;  %v217_v22 = vadd.f32 %v3370_v19, %v2699_v48  ;;  %3503 = vmatpush3.msra.mxu1 %v582_v42  ;;  %v4577_v18 = vld [vmem:[%s5772_s1 + $0x10] sm:$0xff]  ;;  %v4585_v19 = vld [vmem:[%s5772_s1 + $0x18] sm:$0xff]  ;;  %v767_v42 = vld [vmem:[%s5775_s9 + $0x40] sm:$0xff] }
  0xfc   :  { %v211_v23 = vpop.f32.mrf.mxu0  ;;  %3504 = vmatprep.subr.mxu1 %v581_v43 }
  0xfd   :  { %v212_v24 = vadd.f32 %v2699_v48, %v211_v23  ;;  %3421 = vmatprep.mubr.f32.mxu1 %v240_v20  ;;  %v243_v27 = vmax.f32 %v217_v22, 0.0  ;;  %3505 = vmatpush3.msra.mxu1 %v581_v43  ;;  %v4590_v20 = vld [vmem:[%s5772_s1 + $0x20] sm:$0xff]  ;;  %v4602_v22 = vld [vmem:[%s5772_s1 + $0x30] sm:$0xff]  ;;  %v4609_v23 = vld [vmem:[%s5772_s1 + $0x38] sm:$0xff] }
  0xfe   :  { %v3373_v25 = vpop.f32.mrf.mxu0  ;;  %3422 = vmatmul.mubr.f32.gmra.mxu1 %v241_v21  ;;  %3506 = vmatprep.subr.mxu1 %v580_v44  ;;  %v4597_v21 = vld [vmem:[%s5772_s1 + $0x28] sm:$0xff]  ;;  %v766_v43 = vld [vmem:[%s5775_s9 + $0x38] sm:$0xff] }
  0xff   :  { %v242_v26 = vmax.f32 %v212_v24, 0.0  ;;  %v227_v28 = vadd.f32 %v3373_v25, %v2699_v48  ;;  %3507 = vmatpush3.msra.mxu1 %v580_v44  ;;  %v4614_v24 = vld [vmem:[%s5772_s1 + $0x40] sm:$0xff]  ;;  %v4621_v25 = vld [vmem:[%s5772_s1 + $0x48] sm:$0xff]  ;;  %v765_v44 = vld [vmem:[%s5775_s9 + $0x30] sm:$0xff] }
 0x100   :  { %v221_v29 = vpop.f32.mrf.mxu0  ;;  %3508 = vmatprep.subr.mxu1 %v579_v45 }
 0x101   :  { %v222_v30 = vadd.f32 %v2699_v48, %v221_v29  ;;  %3424 = vmatprep.mubr.f32.mxu1 %v242_v26  ;;  %v245_v32 = vmax.f32 %v227_v28, 0.0  ;;  %3509 = vmatpush3.msra.mxu1 %v579_v45  ;;  %v4626_v26 = vld [vmem:[%s5772_s1 + $0x50] sm:$0xff]  ;;  %v4638_v28 = vld [vmem:[%s5772_s1 + $0x60] sm:$0xff]  ;;  %v4645_v29 = vld [vmem:[%s5772_s1 + $0x68] sm:$0xff] }
 0x102   :  { %3425 = vmatmul.mubr.f32.gmra.mxu1 %v243_v27  ;;  %3510 = vmatprep.subr.mxu1 %v578_v46  ;;  %v4633_v27 = vld [vmem:[%s5772_s1 + $0x58] sm:$0xff]  ;;  %v764_v45 = vld [vmem:[%s5775_s9 + $0x28] sm:$0xff] }
 0x103   :  { %v244_v31 = vmax.f32 %v222_v30, 0.0  ;;  %3511 = vmatpush3.msra.mxu1 %v578_v46  ;;  %v4650_v30 = vld [vmem:[%s5772_s1 + $0x70] sm:$0xff]  ;;  %v763_v46 = vld [vmem:[%s5775_s9 + $0x20] sm:$0xff] }
 0x104   :  { %3512 = vmatprep.subr.mxu1 %v577_v47 }
 0x105   :  { %3427 = vmatprep.mubr.f32.mxu1 %v244_v31  ;;  %3513 = vmatpush3.msra.mxu1 %v577_v47  ;;  %v4657_v31 = vld [vmem:[%s5772_s1 + $0x78] sm:$0xff] }
 0x106   :  { %3428 = vmatmul.mubr.f32.gmra.mxu1 %v245_v32  ;;  %v576_v32 = vld [vmem:[%s5773_s7 + $0x8] sm:$0xff] }
 0x107   :  { %3514 = vmatprep.subr.mxu1 %v576_v32 }
 0x108   :  { %3515 = vmatpush3.msra.mxu1 %v576_v32  ;;  %v760_v32 = vld [vmem:[%s5775_s9 + $0x8] sm:$0xff] }
 0x109   :  { %3516 = vmatprep.subr.mxu1 %v575_v34 }
 0x10a   :  { %3517 = vmatpush3.msra.mxu1 %v575_v34  ;;  %v759_v34 = vld [vmem:[%s5775_s9] sm:$0xff] }
 0x1aa   :  { %v3408_v48 = vpop.f32.mrf.mxu1 }
 0x1ab   :  { %v4560_v15 = vadd.f32 %v3408_v48, %v2700_v62 }
 0x1ac   :  { %v335_v49 = vpop.f32.mrf.mxu1 }
 0x1ad   :  { %v4564_v16 = vadd.f32 %v2700_v62, %v335_v49 }
 0x1ae   :  { %v3411_v50 = vpop.f32.mrf.mxu1 }
 0x1af   :  { %v4552_v13 = vadd.f32 %v3411_v50, %v2700_v62 }
 0x1b0   :  { %v345_v51 = vpop.f32.mrf.mxu1 }
 0x1b1   :  { %v4556_v14 = vadd.f32 %v2700_v62, %v345_v51 }
 0x1b2   :  { %v3414_v52 = vpop.f32.mrf.mxu1 }
 0x1b3   :  { %v4544_v11 = vadd.f32 %v3414_v52, %v2700_v62 }
 0x1b4   :  { %v355_v53 = vpop.f32.mrf.mxu1 }
 0x1b5   :  { %v4548_v12 = vadd.f32 %v2700_v62, %v355_v53 }
 0x1b6   :  { %v3417_v54 = vpop.f32.mrf.mxu1 }
 0x1b7   :  { %v4536_v9 = vadd.f32 %v3417_v54, %v2700_v62 }
 0x1b8   :  { %v365_v55 = vpop.f32.mrf.mxu1 }
 0x1b9   :  { %v4540_v10 = vadd.f32 %v2700_v62, %v365_v55 }
 0x1ba   :  { %v3420_v56 = vpop.f32.mrf.mxu1 }
 0x1bb   :  { %v4528_v7 = vadd.f32 %v3420_v56, %v2700_v62 }
 0x1bc   :  { %v375_v57 = vpop.f32.mrf.mxu1 }
 0x1bd   :  { %v4532_v8 = vadd.f32 %v2700_v62, %v375_v57 }
 0x1be   :  { %v3423_v58 = vpop.f32.mrf.mxu1 }
 0x1bf   :  { %v4520_v5 = vadd.f32 %v3423_v58, %v2700_v62 }
 0x1c0   :  { %v385_v59 = vpop.f32.mrf.mxu1 }
 0x1c1   :  { %v4524_v6 = vadd.f32 %v2700_v62, %v385_v59 }
 0x1c2   :  { %v3426_v60 = vpop.f32.mrf.mxu1 }
 0x1c3   :  { %v4512_v3 = vadd.f32 %v3426_v60, %v2700_v62 }
 0x1c4   :  { %v395_v61 = vpop.f32.mrf.mxu1 }
 0x1c5   :  { %v4516_v4 = vadd.f32 %v2700_v62, %v395_v61 }
 0x1c6   :  { %v3429_v63 = vpop.f32.mrf.mxu1 }
 0x1c7   :  { %v4506_v0 = vadd.f32 %v3429_v63, %v2700_v62  ;;  %v762_v63 = vld [vmem:[%s5775_s9 + $0x18] sm:$0xff] }
 0x1c8   :  { %v405_v1 = vpop.f32.mrf.mxu1 }
 0x1c9   :  { %v4508_v2 = vadd.f32 %v2700_v62, %v405_v1  ;;  %3430 = vmatprep.subr.mxu0 %v4506_v0  ;;  %v761_v1 = vld [vmem:[%s5775_s9 + $0x10] sm:$0xff] }
 0x1ca   :  { %3431 = vmatpush3.msra.mxu0 %v4506_v0 }
 0x1cb   :  { %3432 = vmatprep.subr.mxu0 %v4508_v2 }
 0x1cc   :  { %3433 = vmatpush3.msra.mxu0 %v4508_v2 }
 0x1cd   :  { %3434 = vmatprep.subr.mxu0 %v4512_v3 }
 0x1ce   :  { %3435 = vmatpush3.msra.mxu0 %v4512_v3 }
 0x1cf   :  { %3436 = vmatprep.subr.mxu0 %v4516_v4 }
 0x1d0   :  { %3437 = vmatpush3.msra.mxu0 %v4516_v4 }
 0x1d1   :  { %3438 = vmatprep.subr.mxu0 %v4520_v5 }
 0x1d2   :  { %3439 = vmatpush3.msra.mxu0 %v4520_v5 }
 0x1d3   :  { %3440 = vmatprep.subr.mxu0 %v4524_v6 }
 0x1d4   :  { %3441 = vmatpush3.msra.mxu0 %v4524_v6 }
 0x1d5   :  { %3442 = vmatprep.subr.mxu0 %v4528_v7 }
 0x1d6   :  { %3443 = vmatpush3.msra.mxu0 %v4528_v7 }
 0x1d7   :  { %3444 = vmatprep.subr.mxu0 %v4532_v8 }
 0x1d8   :  { %3445 = vmatpush3.msra.mxu0 %v4532_v8 }
 0x1d9   :  { %3446 = vmatprep.subr.mxu0 %v4536_v9 }
 0x1da   :  { %3447 = vmatpush3.msra.mxu0 %v4536_v9 }
 0x1db   :  { %3448 = vmatprep.subr.mxu0 %v4540_v10 }
 0x1dc   :  { %3449 = vmatpush3.msra.mxu0 %v4540_v10 }
 0x1dd   :  { %3450 = vmatprep.subr.mxu0 %v4544_v11 }
 0x1de   :  { %3451 = vmatpush3.msra.mxu0 %v4544_v11 }
 0x1df   :  { %3452 = vmatprep.subr.mxu0 %v4548_v12 }
 0x1e0   :  { %3453 = vmatpush3.msra.mxu0 %v4548_v12 }
 0x1e1   :  { %3454 = vmatprep.subr.mxu0 %v4552_v13 }
 0x1e2   :  { %3455 = vmatpush3.msra.mxu0 %v4552_v13 }
 0x1e3   :  { %3456 = vmatprep.subr.mxu0 %v4556_v14 }
 0x1e4   :  { %3457 = vmatpush3.msra.mxu0 %v4556_v14 }
 0x1e5   :  { %3458 = vmatprep.subr.mxu0 %v4560_v15 }
 0x1e6   :  { %3459 = vmatpush3.msra.mxu0 %v4560_v15 }
 0x1e7   :  { %3460 = vmatprep.subr.mxu0 %v4564_v16 }
 0x1e8   :  { %3461 = vmatpush3.msra.mxu0 %v4564_v16 }
 0x1e9   :  { %3463 = vmatmul.mubr.f32.vlgmr.msra.gmra.mxu0 %v4571_v17  ;;  %3542 = vmatprep.subr.mxu0 %v774_v35 }
 0x1ea   :  { %3465 = vmatprep.mubr.f32.mxu0 %v4577_v18  ;;  %3543 = vmatpush3.msra.mxu0 %v774_v35  ;;  %v2701_v35 = vld [vmem:[%s5776_s8] ss:$0 sm:$0xff] }
 0x1eb   :  { %3544 = vmatprep.subr.mxu0 %v773_v36 }
 0x1ec   :  { %3545 = vmatpush3.msra.mxu0 %v773_v36 }
 0x1ed   :  { %3466 = vmatmul.mubr.f32.gmra.mxu0 %v4585_v19  ;;  %3546 = vmatprep.subr.mxu0 %v772_v37 }
 0x1ee   :  { %3468 = vmatprep.mubr.f32.mxu0 %v4590_v20  ;;  %3547 = vmatpush3.msra.mxu0 %v772_v37 }
 0x1ef   :  { %3548 = vmatprep.subr.mxu0 %v771_v38 }
 0x1f0   :  { %3549 = vmatpush3.msra.mxu0 %v771_v38 }
 0x1f1   :  { %3469 = vmatmul.mubr.f32.gmra.mxu0 %v4597_v21  ;;  %3550 = vmatprep.subr.mxu0 %v770_v39 }
 0x1f2   :  { %3471 = vmatprep.mubr.f32.mxu0 %v4602_v22  ;;  %3551 = vmatpush3.msra.mxu0 %v770_v39 }
 0x1f3   :  { %3552 = vmatprep.subr.mxu0 %v769_v40 }
 0x1f4   :  { %3553 = vmatpush3.msra.mxu0 %v769_v40 }
 0x1f5   :  { %3472 = vmatmul.mubr.f32.gmra.mxu0 %v4609_v23  ;;  %3554 = vmatprep.subr.mxu0 %v768_v41 }
 0x1f6   :  { %3474 = vmatprep.mubr.f32.mxu0 %v4614_v24  ;;  %3555 = vmatpush3.msra.mxu0 %v768_v41 }
 0x1f7   :  { %3556 = vmatprep.subr.mxu0 %v767_v42 }
 0x1f8   :  { %3557 = vmatpush3.msra.mxu0 %v767_v42 }
 0x1f9   :  { %3475 = vmatmul.mubr.f32.gmra.mxu0 %v4621_v25  ;;  %3558 = vmatprep.subr.mxu0 %v766_v43 }
 0x1fa   :  { %3477 = vmatprep.mubr.f32.mxu0 %v4626_v26  ;;  %3559 = vmatpush3.msra.mxu0 %v766_v43 }
 0x1fb   :  { %3560 = vmatprep.subr.mxu0 %v765_v44 }
 0x1fc   :  { %3561 = vmatpush3.msra.mxu0 %v765_v44 }
 0x1fd   :  { %3478 = vmatmul.mubr.f32.gmra.mxu0 %v4633_v27  ;;  %3562 = vmatprep.subr.mxu0 %v764_v45 }
 0x1fe   :  { %3480 = vmatprep.mubr.f32.mxu0 %v4638_v28  ;;  %3563 = vmatpush3.msra.mxu0 %v764_v45 }
 0x1ff   :  { %3564 = vmatprep.subr.mxu0 %v763_v46 }
 0x200   :  { %3565 = vmatpush3.msra.mxu0 %v763_v46 }
 0x201   :  { %3481 = vmatmul.mubr.f32.gmra.mxu0 %v4645_v29  ;;  %3566 = vmatprep.subr.mxu0 %v762_v63 }
 0x202   :  { %3483 = vmatprep.mubr.f32.mxu0 %v4650_v30  ;;  %3567 = vmatpush3.msra.mxu0 %v762_v63 }
 0x203   :  { %3568 = vmatprep.subr.mxu0 %v761_v1 }
 0x204   :  { %3569 = vmatpush3.msra.mxu0 %v761_v1 }
 0x205   :  { %3484 = vmatmul.mubr.f32.gmra.mxu0 %v4657_v31  ;;  %3570 = vmatprep.subr.mxu0 %v760_v32 }
 0x206   :  { %3571 = vmatpush3.msra.mxu0 %v760_v32 }
 0x207   :  { %3572 = vmatprep.subr.mxu0 %v759_v34 }
 0x208   :  { %3573 = vmatpush3.msra.mxu0 %v759_v34 }
 0x2a9   :  { %v3464_v47 = vpop.f32.mrf.mxu0 }
 0x2ab   :  { %v496_v48 = vpop.f32.mrf.mxu0 }
 0x2ac   :  { %3518 = vmatprep.mubr.f32.mxu1 %v496_v48 }
 0x2ad   :  { %v3467_v49 = vpop.f32.mrf.mxu0  ;;  %3519 = vmatmul.mubr.f32.vlgmr.msra.gmra.mxu1 %v3464_v47 }
 0x2af   :  { %v506_v50 = vpop.f32.mrf.mxu0 }
 0x2b0   :  { %3521 = vmatprep.mubr.f32.mxu1 %v506_v50 }
 0x2b1   :  { %v3470_v51 = vpop.f32.mrf.mxu0  ;;  %3522 = vmatmul.mubr.f32.gmra.mxu1 %v3467_v49 }
 0x2b3   :  { %v516_v52 = vpop.f32.mrf.mxu0 }
 0x2b4   :  { %3524 = vmatprep.mubr.f32.mxu1 %v516_v52 }
 0x2b5   :  { %v3473_v53 = vpop.f32.mrf.mxu0  ;;  %3525 = vmatmul.mubr.f32.gmra.mxu1 %v3470_v51 }
 0x2b7   :  { %v526_v54 = vpop.f32.mrf.mxu0 }
 0x2b8   :  { %3527 = vmatprep.mubr.f32.mxu1 %v526_v54 }
 0x2b9   :  { %v3476_v55 = vpop.f32.mrf.mxu0  ;;  %3528 = vmatmul.mubr.f32.gmra.mxu1 %v3473_v53 }
 0x2bb   :  { %v536_v56 = vpop.f32.mrf.mxu0 }
 0x2bc   :  { %3530 = vmatprep.mubr.f32.mxu1 %v536_v56 }
 0x2bd   :  { %v3479_v57 = vpop.f32.mrf.mxu0  ;;  %3531 = vmatmul.mubr.f32.gmra.mxu1 %v3476_v55 }
 0x2bf   :  { %v546_v58 = vpop.f32.mrf.mxu0 }
 0x2c0   :  { %3533 = vmatprep.mubr.f32.mxu1 %v546_v58 }
 0x2c1   :  { %v3482_v59 = vpop.f32.mrf.mxu0  ;;  %3534 = vmatmul.mubr.f32.gmra.mxu1 %v3479_v57 }
 0x2c3   :  { %v556_v60 = vpop.f32.mrf.mxu0 }
 0x2c4   :  { %3536 = vmatprep.mubr.f32.mxu1 %v556_v60 }
 0x2c5   :  { %v3485_v61 = vpop.f32.mrf.mxu0  ;;  %3537 = vmatmul.mubr.f32.gmra.mxu1 %v3482_v59 }
 0x2c7   :  { %v566_v62 = vpop.f32.mrf.mxu0 }
 0x2c8   :  { %3539 = vmatprep.mubr.f32.mxu1 %v566_v62 }
 0x2c9   :  { %3540 = vmatmul.mubr.f32.gmra.mxu1 %v3485_v61 }
 0x2ca   :  { %3630 = vmatprep.mubr.f32.mxu1 %v4458_v33 }
 0x36d   :  { %v3520_v36 = vpop.f32.mrf.mxu1 }
 0x36e   :  { %v670_v37 = vadd.f32 %v3520_v36, %v2701_v35 }
 0x36f   :  { %v664_v38 = vpop.f32.mrf.mxu1 }
 0x370   :  { %v665_v39 = vadd.f32 %v2701_v35, %v664_v38  ;;  %v744_v42 = vmax.f32 %v670_v37, 0.0 }
 0x371   :  { %v3523_v40 = vpop.f32.mrf.mxu1 }
 0x372   :  { %v743_v41 = vmax.f32 %v665_v39, 0.0  ;;  %v680_v43 = vadd.f32 %v3523_v40, %v2701_v35 }
 0x373   :  { %v674_v44 = vpop.f32.mrf.mxu1 }
 0x374   :  { %v675_v45 = vadd.f32 %v2701_v35, %v674_v44  ;;  %3574 = vmatprep.mubr.f32.mxu0 %v743_v41  ;;  %v746_v48 = vmax.f32 %v680_v43, 0.0 }
 0x375   :  { %v3526_v46 = vpop.f32.mrf.mxu1  ;;  %3575 = vmatmul.mubr.f32.vlgmr.msra.gmra.mxu0 %v744_v42 }
 0x376   :  { %v745_v47 = vmax.f32 %v675_v45, 0.0  ;;  %v690_v49 = vadd.f32 %v3526_v46, %v2701_v35 }
 0x377   :  { %v684_v50 = vpop.f32.mrf.mxu1 }
 0x378   :  { %v685_v51 = vadd.f32 %v2701_v35, %v684_v50  ;;  %3577 = vmatprep.mubr.f32.mxu0 %v745_v47  ;;  %v748_v54 = vmax.f32 %v690_v49, 0.0 }
 0x379   :  { %v3529_v52 = vpop.f32.mrf.mxu1  ;;  %3578 = vmatmul.mubr.f32.gmra.mxu0 %v746_v48 }
 0x37a   :  { %v747_v53 = vmax.f32 %v685_v51, 0.0  ;;  %v700_v55 = vadd.f32 %v3529_v52, %v2701_v35 }
 0x37b   :  { %v694_v56 = vpop.f32.mrf.mxu1 }
 0x37c   :  { %v695_v57 = vadd.f32 %v2701_v35, %v694_v56  ;;  %3580 = vmatprep.mubr.f32.mxu0 %v747_v53  ;;  %v750_v60 = vmax.f32 %v700_v55, 0.0  ;;  %v2718_v53 = vld [vmem:[%s5773_s7 + $0xf8] sm:$0xff]  ;;  %v2715_v55 = vld [vmem:[%s5773_s7 + $0xe0] sm:$0xff] }
 0x37d   :  { %v3532_v58 = vpop.f32.mrf.mxu1  ;;  %3581 = vmatmul.mubr.f32.gmra.mxu0 %v748_v54  ;;  %v2717_v54 = vld [vmem:[%s5773_s7 + $0xf0] sm:$0xff]  ;;  %3654 = vmatprep.subr.mxu0 %v2718_v53  ;;  %v2714_v56 = vld [vmem:[%s5773_s7 + $0xd8] sm:$0xff] }
 0x37e   :  { %v749_v59 = vmax.f32 %v695_v57, 0.0  ;;  %v710_v61 = vadd.f32 %v3532_v58, %v2701_v35  ;;  %3655 = vmatpush3.msra.mxu0 %v2718_v53  ;;  %v2713_v57 = vld [vmem:[%s5773_s7 + $0xd0] sm:$0xff]  ;;  %v2712_v58 = vld [vmem:[%s5773_s7 + $0xc8] sm:$0xff] }
 0x37f   :  { %v704_v62 = vpop.f32.mrf.mxu1  ;;  %3656 = vmatprep.subr.mxu0 %v2717_v54 }
 0x380   :  { %v705_v63 = vadd.f32 %v2701_v35, %v704_v62  ;;  %3583 = vmatprep.mubr.f32.mxu0 %v749_v59  ;;  %v752_v34 = vmax.f32 %v710_v61, 0.0  ;;  %3657 = vmatpush3.msra.mxu0 %v2717_v54  ;;  %v2711_v59 = vld [vmem:[%s5773_s7 + $0xc0] sm:$0xff]  ;;  %v2709_v61 = vld [vmem:[%s5773_s7 + $0xb0] sm:$0xff]  ;;  %v2708_v62 = vld [vmem:[%s5773_s7 + $0xa8] sm:$0xff] }
 0x381   :  { %v3535_v1 = vpop.f32.mrf.mxu1  ;;  %3584 = vmatmul.mubr.f32.gmra.mxu0 %v750_v60  ;;  %v2710_v60 = vld [vmem:[%s5773_s7 + $0xb8] sm:$0xff] }
 0x382   :  { %v751_v32 = vmax.f32 %v705_v63, 0.0  ;;  %v720_v36 = vadd.f32 %v3535_v1, %v2701_v35  ;;  %v2707_v63 = vld [vmem:[%s5773_s7 + $0xa0] sm:$0xff]  ;;  %v2706_v1 = vld [vmem:[%s5773_s7 + $0x98] sm:$0xff] }
 0x383   :  { %v714_v37 = vpop.f32.mrf.mxu1 }
 0x384   :  { %v715_v38 = vadd.f32 %v2701_v35, %v714_v37  ;;  %3586 = vmatprep.mubr.f32.mxu0 %v751_v32  ;;  %v754_v41 = vmax.f32 %v720_v36, 0.0  ;;  %v2705_v32 = vld [vmem:[%s5773_s7 + $0x90] sm:$0xff] }
 0x385   :  { %v3538_v39 = vpop.f32.mrf.mxu1  ;;  %3587 = vmatmul.mubr.f32.gmra.mxu0 %v752_v34 }
 0x386   :  { %v753_v40 = vmax.f32 %v715_v38, 0.0  ;;  %v730_v42 = vadd.f32 %v3538_v39, %v2701_v35 }
 0x387   :  { %v724_v43 = vpop.f32.mrf.mxu1 }
 0x388   :  { %v725_v44 = vadd.f32 %v2701_v35, %v724_v43  ;;  %3589 = vmatprep.mubr.f32.mxu0 %v753_v40  ;;  %v756_v47 = vmax.f32 %v730_v42, 0.0 }
 0x389   :  { %v3541_v45 = vpop.f32.mrf.mxu1  ;;  %3590 = vmatmul.mubr.f32.gmra.mxu0 %v754_v41 }
 0x38a   :  { %v755_v46 = vmax.f32 %v725_v44, 0.0  ;;  %v740_v48 = vadd.f32 %v3541_v45, %v2701_v35 }
 0x38b   :  { %v734_v49 = vpop.f32.mrf.mxu1 }
 0x38c   :  { %v735_v50 = vadd.f32 %v2701_v35, %v734_v49  ;;  %3592 = vmatprep.mubr.f32.mxu0 %v755_v46  ;;  %v758_v52 = vmax.f32 %v740_v48, 0.0  ;;  %v2716_v35 = vld [vmem:[%s5773_s7 + $0xe8] sm:$0xff]  ;;  %v2702_v49 = vld [vmem:[%s5777_s10] ss:$0 sm:$0xff] }
 0x38d   :  { %3593 = vmatmul.mubr.f32.gmra.mxu0 %v756_v47  ;;  %3658 = vmatprep.subr.mxu0 %v2716_v35 }
 0x38e   :  { %v757_v51 = vmax.f32 %v735_v50, 0.0  ;;  %3659 = vmatpush3.msra.mxu0 %v2716_v35 }
 0x38f   :  { %3660 = vmatprep.subr.mxu0 %v2715_v55 }
 0x390   :  { %3595 = vmatprep.mubr.f32.mxu0 %v757_v51  ;;  %3661 = vmatpush3.msra.mxu0 %v2715_v55 }
 0x391   :  { %3596 = vmatmul.mubr.f32.gmra.mxu0 %v758_v52  ;;  %3662 = vmatprep.subr.mxu0 %v2714_v56 }
 0x392   :  { %3663 = vmatpush3.msra.mxu0 %v2714_v56 }
 0x393   :  { %3664 = vmatprep.subr.mxu0 %v2713_v57 }
 0x394   :  { %3665 = vmatpush3.msra.mxu0 %v2713_v57 }
 0x395   :  { %3666 = vmatprep.subr.mxu0 %v2712_v58 }
 0x396   :  { %3667 = vmatpush3.msra.mxu0 %v2712_v58 }
 0x397   :  { %3668 = vmatprep.subr.mxu0 %v2711_v59 }
 0x398   :  { %3669 = vmatpush3.msra.mxu0 %v2711_v59 }
 0x399   :  { %3670 = vmatprep.subr.mxu0 %v2710_v60 }
 0x39a   :  { %3671 = vmatpush3.msra.mxu0 %v2710_v60 }
 0x39b   :  { %3672 = vmatprep.subr.mxu0 %v2709_v61 }
 0x39c   :  { %3673 = vmatpush3.msra.mxu0 %v2709_v61 }
 0x39d   :  { %3674 = vmatprep.subr.mxu0 %v2708_v62 }
 0x39e   :  { %3675 = vmatpush3.msra.mxu0 %v2708_v62 }
 0x39f   :  { %3676 = vmatprep.subr.mxu0 %v2707_v63 }
 0x3a0   :  { %3677 = vmatpush3.msra.mxu0 %v2707_v63 }
 0x3a1   :  { %3678 = vmatprep.subr.mxu0 %v2706_v1 }
 0x3a2   :  { %3679 = vmatpush3.msra.mxu0 %v2706_v1 }
 0x3a3   :  { %3680 = vmatprep.subr.mxu0 %v2705_v32 }
 0x3a4   :  { %3681 = vmatpush3.msra.mxu0 %v2705_v32 }
 0x435   :  { %v4760_v34 = vpop.f32.mrf.mxu0 }
 0x437   :  { %v4762_v36 = vpop.f32.mrf.mxu0 }
 0x439   :  { %v3579_v37 = vpop.f32.mrf.mxu0 }
 0x43b   :  { %v858_v38 = vpop.f32.mrf.mxu0 }
 0x43d   :  { %v3582_v39 = vpop.f32.mrf.mxu0 }
 0x43f   :  { %v868_v40 = vpop.f32.mrf.mxu0 }
 0x441   :  { %v3585_v41 = vpop.f32.mrf.mxu0 }
 0x442   :  { %v884_v32 = vadd.f32 %v3585_v41, %v2702_v49  ;;  %v869_v41 = vadd.f32 %v2702_v49, %v868_v40  ;;  %v854_v40 = vadd.f32 %v4760_v34, %v2702_v49 }
 0x443   :  { %v878_v42 = vpop.f32.mrf.mxu0 }
 0x445   :  { %v3588_v43 = vpop.f32.mrf.mxu0 }
 0x446   :  { %v894_v61 = vadd.f32 %v3588_v43, %v2702_v49  ;;  %v879_v43 = vadd.f32 %v2702_v49, %v878_v42  ;;  %v864_v42 = vadd.f32 %v3579_v37, %v2702_v49  ;;  %v849_v37 = vadd.f32 %v2702_v49, %v4762_v36 }
 0x447   :  { %v888_v44 = vpop.f32.mrf.mxu0 }
 0x448   :  { %v889_v63 = vadd.f32 %v2702_v49, %v888_v44  ;;  %v874_v44 = vadd.f32 %v3582_v39, %v2702_v49  ;;  %v859_v39 = vadd.f32 %v2702_v49, %v858_v38  ;;  %v4823_v38 = vmax.f32 %v854_v40, 0.0 }
 0x449   :  { %v3591_v45 = vpop.f32.mrf.mxu0  ;;  %v4827_v34 = vmax.f32 %v849_v37, 0.0  ;;  %v2724_v37 = vld [vmem:[%s5775_s9 + $0x98] sm:$0xff] }
 0x44a   :  { %v904_v57 = vadd.f32 %v3591_v45, %v2702_v49  ;;  %v4789_v45 = vmax.f32 %v894_v61, 0.0 }
 0x44b   :  { %v898_v46 = vpop.f32.mrf.mxu0 }
 0x44c   :  { %v899_v59 = vadd.f32 %v2702_v49, %v898_v46  ;;  %v4781_v62 = vmax.f32 %v904_v57, 0.0  ;;  %v4793_v46 = vmax.f32 %v889_v63, 0.0 }
 0x44d   :  { %v3594_v47 = vpop.f32.mrf.mxu0 }
 0x44e   :  { %v914_v53 = vadd.f32 %v3594_v47, %v2702_v49  ;;  %v4785_v1 = vmax.f32 %v899_v59, 0.0  ;;  %v4797_v47 = vmax.f32 %v884_v32, 0.0 }
 0x44f   :  { %v908_v48 = vpop.f32.mrf.mxu0 }
 0x450   :  { %v909_v55 = vadd.f32 %v2702_v49, %v908_v48  ;;  %v4773_v58 = vmax.f32 %v914_v53, 0.0  ;;  %v4801_v48 = vmax.f32 %v879_v43, 0.0  ;;  %v4819_v53 = vmax.f32 %v859_v39, 0.0 }
 0x451   :  { %v3597_v50 = vpop.f32.mrf.mxu0 }
 0x452   :  { %v924_v51 = vadd.f32 %v3597_v50, %v2702_v49  ;;  %v4777_v60 = vmax.f32 %v909_v55, 0.0  ;;  %v4805_v50 = vmax.f32 %v874_v44, 0.0 }
 0x453   :  { %v918_v52 = vpop.f32.mrf.mxu0 }
 0x454   :  { %v4767_v54 = vmax.f32 %v924_v51, 0.0  ;;  %v919_v35 = vadd.f32 %v2702_v49, %v918_v52  ;;  %v4809_v51 = vmax.f32 %v869_v41, 0.0  ;;  %v4814_v52 = vmax.f32 %v864_v42, 0.0 }
 0x456   :  { %v4769_v56 = vmax.f32 %v919_v35, 0.0  ;;  %3598 = vmatprep.subr.mxu1 %v4767_v54 }
 0x457   :  { %3599 = vmatpush3.msra.mxu1 %v4767_v54 }
 0x458   :  { %3600 = vmatprep.subr.mxu1 %v4769_v56 }
 0x459   :  { %3601 = vmatpush3.msra.mxu1 %v4769_v56 }
 0x45a   :  { %3602 = vmatprep.subr.mxu1 %v4773_v58 }
 0x45b   :  { %3603 = vmatpush3.msra.mxu1 %v4773_v58 }
 0x45c   :  { %3604 = vmatprep.subr.mxu1 %v4777_v60 }
 0x45d   :  { %3605 = vmatpush3.msra.mxu1 %v4777_v60 }
 0x45e   :  { %3606 = vmatprep.subr.mxu1 %v4781_v62 }
 0x45f   :  { %3607 = vmatpush3.msra.mxu1 %v4781_v62 }
 0x460   :  { %3608 = vmatprep.subr.mxu1 %v4785_v1 }
 0x461   :  { %3609 = vmatpush3.msra.mxu1 %v4785_v1 }
 0x462   :  { %3610 = vmatprep.subr.mxu1 %v4789_v45 }
 0x463   :  { %3611 = vmatpush3.msra.mxu1 %v4789_v45 }
 0x464   :  { %3612 = vmatprep.subr.mxu1 %v4793_v46 }
 0x465   :  { %3613 = vmatpush3.msra.mxu1 %v4793_v46 }
 0x466   :  { %3614 = vmatprep.subr.mxu1 %v4797_v47 }
 0x467   :  { %3615 = vmatpush3.msra.mxu1 %v4797_v47 }
 0x468   :  { %3616 = vmatprep.subr.mxu1 %v4801_v48 }
 0x469   :  { %3617 = vmatpush3.msra.mxu1 %v4801_v48 }
 0x46a   :  { %3618 = vmatprep.subr.mxu1 %v4805_v50 }
 0x46b   :  { %3619 = vmatpush3.msra.mxu1 %v4805_v50 }
 0x46c   :  { %3620 = vmatprep.subr.mxu1 %v4809_v51 }
 0x46d   :  { %3621 = vmatpush3.msra.mxu1 %v4809_v51 }
 0x46e   :  { %3622 = vmatprep.subr.mxu1 %v4814_v52 }
 0x46f   :  { %3623 = vmatpush3.msra.mxu1 %v4814_v52 }
 0x470   :  { %3624 = vmatprep.subr.mxu1 %v4819_v53 }
 0x471   :  { %3625 = vmatpush3.msra.mxu1 %v4819_v53 }
 0x472   :  { %3626 = vmatprep.subr.mxu1 %v4823_v38 }
 0x473   :  { %3627 = vmatpush3.msra.mxu1 %v4823_v38 }
 0x474   :  { %3628 = vmatprep.subr.mxu1 %v4827_v34 }
 0x475   :  { %3629 = vmatpush3.msra.mxu1 %v4827_v34 }
 0x476   :  { %3631 = vmatmul.mubr.f32.vlgmr.msra.gmra.mxu1 %v4571_v17  ;;  %v2704_v17 = vld [vmem:[%s5773_s7 + $0x88] sm:$0xff] }
 0x477   :  { %3633 = vmatprep.mubr.f32.mxu1 %v4577_v18  ;;  %3682 = vmatprep.subr.mxu0 %v2704_v17  ;;  %v2703_v18 = vld [vmem:[%s5773_s7 + $0x80] sm:$0xff] }
 0x478   :  { %3683 = vmatpush3.msra.mxu0 %v2704_v17  ;;  %v2723_v17 = vld [vmem:[%s5775_s9 + $0x90] sm:$0xff] }
 0x479   :  { %3684 = vmatprep.subr.mxu0 %v2703_v18 }
 0x47a   :  { %3634 = vmatmul.mubr.f32.gmra.mxu1 %v4585_v19  ;;  %3685 = vmatpush3.msra.mxu0 %v2703_v18  ;;  %v2736_v19 = vld [vmem:[%s5775_s9 + $0xf8] sm:$0xff]  ;;  %v2722_v18 = vld [vmem:[%s5775_s9 + $0x88] sm:$0xff] }
 0x47b   :  { %3636 = vmatprep.mubr.f32.mxu1 %v4590_v20  ;;  %v2735_v20 = vld [vmem:[%s5775_s9 + $0xf0] sm:$0xff]  ;;  %3710 = vmatprep.subr.mxu1 %v2736_v19 }
 0x47c   :  { %3711 = vmatpush3.msra.mxu1 %v2736_v19  ;;  %v2720_v19 = vld [vmem:[%s5776_s8 + $0x1] ss:$0 sm:$0xff] }
 0x47d   :  { %3712 = vmatprep.subr.mxu1 %v2735_v20 }
 0x47e   :  { %3637 = vmatmul.mubr.f32.gmra.mxu1 %v4597_v21  ;;  %v2734_v21 = vld [vmem:[%s5775_s9 + $0xe8] sm:$0xff] }
 0x47f   :  { %3639 = vmatprep.mubr.f32.mxu1 %v4602_v22  ;;  %3713 = vmatpush3.msra.mxu1 %v2735_v20  ;;  %v2733_v22 = vld [vmem:[%s5775_s9 + $0xe0] sm:$0xff] }
 0x480   :  { %3714 = vmatprep.subr.mxu1 %v2734_v21 }
 0x481   :  { %3715 = vmatpush3.msra.mxu1 %v2734_v21 }
 0x482   :  { %3640 = vmatmul.mubr.f32.gmra.mxu1 %v4609_v23  ;;  %v2732_v23 = vld [vmem:[%s5775_s9 + $0xd8] sm:$0xff]  ;;  %3716 = vmatprep.subr.mxu1 %v2733_v22 }
 0x483   :  { %3642 = vmatprep.mubr.f32.mxu1 %v4614_v24  ;;  %3717 = vmatpush3.msra.mxu1 %v2733_v22  ;;  %v2731_v24 = vld [vmem:[%s5775_s9 + $0xd0] sm:$0xff] }
 0x484   :  { %3718 = vmatprep.subr.mxu1 %v2732_v23 }
 0x485   :  { %3719 = vmatpush3.msra.mxu1 %v2732_v23 }
 0x486   :  { %3643 = vmatmul.mubr.f32.gmra.mxu1 %v4621_v25  ;;  %v2730_v25 = vld [vmem:[%s5775_s9 + $0xc8] sm:$0xff]  ;;  %3720 = vmatprep.subr.mxu1 %v2731_v24 }
 0x487   :  { %3645 = vmatprep.mubr.f32.mxu1 %v4626_v26  ;;  %3721 = vmatpush3.msra.mxu1 %v2731_v24  ;;  %v2729_v26 = vld [vmem:[%s5775_s9 + $0xc0] sm:$0xff] }
 0x488   :  { %3722 = vmatprep.subr.mxu1 %v2730_v25 }
 0x489   :  { %3723 = vmatpush3.msra.mxu1 %v2730_v25 }
 0x48a   :  { %3646 = vmatmul.mubr.f32.gmra.mxu1 %v4633_v27  ;;  %v2728_v27 = vld [vmem:[%s5775_s9 + $0xb8] sm:$0xff]  ;;  %3724 = vmatprep.subr.mxu1 %v2729_v26 }
 0x48b   :  { %3648 = vmatprep.mubr.f32.mxu1 %v4638_v28  ;;  %3725 = vmatpush3.msra.mxu1 %v2729_v26  ;;  %v2727_v28 = vld [vmem:[%s5775_s9 + $0xb0] sm:$0xff] }
 0x48c   :  { %3726 = vmatprep.subr.mxu1 %v2728_v27 }
 0x48d   :  { %3727 = vmatpush3.msra.mxu1 %v2728_v27 }
 0x48e   :  { %3649 = vmatmul.mubr.f32.gmra.mxu1 %v4645_v29  ;;  %v2726_v29 = vld [vmem:[%s5775_s9 + $0xa8] sm:$0xff]  ;;  %3728 = vmatprep.subr.mxu1 %v2727_v28 }
 0x48f   :  { %3651 = vmatprep.mubr.f32.mxu1 %v4650_v30  ;;  %3729 = vmatpush3.msra.mxu1 %v2727_v28  ;;  %v2725_v30 = vld [vmem:[%s5775_s9 + $0xa0] sm:$0xff] }
 0x490   :  { %3730 = vmatprep.subr.mxu1 %v2726_v29 }
 0x491   :  { %3731 = vmatpush3.msra.mxu1 %v2726_v29 }
 0x492   :  { %3652 = vmatmul.mubr.f32.gmra.mxu1 %v4657_v31  ;;  %3732 = vmatprep.subr.mxu1 %v2725_v30 }
 0x493   :  { %3733 = vmatpush3.msra.mxu1 %v2725_v30 }
 0x494   :  { %3734 = vmatprep.subr.mxu1 %v2724_v37 }
 0x495   :  { %3735 = vmatpush3.msra.mxu1 %v2724_v37 }
 0x496   :  { %3736 = vmatprep.subr.mxu1 %v2723_v17 }
 0x497   :  { %3737 = vmatpush3.msra.mxu1 %v2723_v17 }
 0x498   :  { %3738 = vmatprep.subr.mxu1 %v2722_v18 }
 0x499   :  { %3739 = vmatpush3.msra.mxu1 %v2722_v18 }
 0x536   :  { %v3632_v31 = vpop.f32.mrf.mxu1 }
 0x538   :  { %v1009_v36 = vpop.f32.mrf.mxu1 }
 0x539   :  { %3686 = vmatprep.mubr.f32.mxu0 %v1009_v36 }
 0x53a   :  { %v3635_v49 = vpop.f32.mrf.mxu1  ;;  %3687 = vmatmul.mubr.f32.vlgmr.msra.gmra.mxu0 %v3632_v31 }
 0x53c   :  { %v1019_v35 = vpop.f32.mrf.mxu1 }
 0x53d   :  { %3689 = vmatprep.mubr.f32.mxu0 %v1019_v35 }
 0x53e   :  { %v3638_v55 = vpop.f32.mrf.mxu1  ;;  %3690 = vmatmul.mubr.f32.gmra.mxu0 %v3635_v49 }
 0x540   :  { %v1029_v57 = vpop.f32.mrf.mxu1 }
 0x541   :  { %3692 = vmatprep.mubr.f32.mxu0 %v1029_v57 }
 0x542   :  { %v3641_v59 = vpop.f32.mrf.mxu1  ;;  %3693 = vmatmul.mubr.f32.gmra.mxu0 %v3638_v55 }
 0x544   :  { %v1039_v61 = vpop.f32.mrf.mxu1 }
 0x545   :  { %3695 = vmatprep.mubr.f32.mxu0 %v1039_v61 }
 0x546   :  { %v3644_v63 = vpop.f32.mrf.mxu1  ;;  %3696 = vmatmul.mubr.f32.gmra.mxu0 %v3641_v59 }
 0x548   :  { %v1049_v32 = vpop.f32.mrf.mxu1 }
 0x549   :  { %3698 = vmatprep.mubr.f32.mxu0 %v1049_v32 }
 0x54a   :  { %v3647_v43 = vpop.f32.mrf.mxu1  ;;  %3699 = vmatmul.mubr.f32.gmra.mxu0 %v3644_v63 }
 0x54c   :  { %v1059_v44 = vpop.f32.mrf.mxu1 }
 0x54d   :  { %3701 = vmatprep.mubr.f32.mxu0 %v1059_v44 }
 0x54e   :  { %v3650_v41 = vpop.f32.mrf.mxu1  ;;  %3702 = vmatmul.mubr.f32.gmra.mxu0 %v3647_v43 }
 0x550   :  { %v1069_v42 = vpop.f32.mrf.mxu1 }
 0x551   :  { %3704 = vmatprep.mubr.f32.mxu0 %v1069_v42 }
 0x552   :  { %v3653_v39 = vpop.f32.mrf.mxu1  ;;  %3705 = vmatmul.mubr.f32.gmra.mxu0 %v3650_v41 }
 0x554   :  { %v1079_v40 = vpop.f32.mrf.mxu1 }
 0x555   :  { %3707 = vmatprep.mubr.f32.mxu0 %v1079_v40 }
 0x556   :  { %3708 = vmatmul.mubr.f32.gmra.mxu0 %v3653_v39 }
 0x557   :  { %3798 = vmatprep.mubr.f32.mxu0 %v4458_v33  ;;  %v2721_v33 = vld [vmem:[%s5775_s9 + $0x80] sm:$0xff] }
 0x558   :  { %3740 = vmatprep.subr.mxu1 %v2721_v33 }
 0x559   :  { %3741 = vmatpush3.msra.mxu1 %v2721_v33 }
 0x5fa   :  { %v3688_v20 = vpop.f32.mrf.mxu0 }
 0x5fb   :  { %v1185_v21 = vadd.f32 %v3688_v20, %v2720_v19 }
 0x5fc   :  { %v1179_v22 = vpop.f32.mrf.mxu0 }
 0x5fd   :  { %v1180_v23 = vadd.f32 %v2720_v19, %v1179_v22  ;;  %v1259_v26 = vmax.f32 %v1185_v21, 0.0 }
 0x5fe   :  { %v3691_v24 = vpop.f32.mrf.mxu0 }
 0x5ff   :  { %v1258_v25 = vmax.f32 %v1180_v23, 0.0  ;;  %v1195_v27 = vadd.f32 %v3691_v24, %v2720_v19 }
 0x600   :  { %v1189_v28 = vpop.f32.mrf.mxu0 }
 0x601   :  { %v1190_v29 = vadd.f32 %v2720_v19, %v1189_v28  ;;  %3742 = vmatprep.mubr.f32.mxu1 %v1258_v25  ;;  %v1261_v36 = vmax.f32 %v1195_v27, 0.0 }
 0x602   :  { %v3694_v30 = vpop.f32.mrf.mxu0  ;;  %3743 = vmatmul.mubr.f32.vlgmr.msra.gmra.mxu1 %v1259_v26 }
 0x603   :  { %v1260_v31 = vmax.f32 %v1190_v29, 0.0  ;;  %v1205_v49 = vadd.f32 %v3694_v30, %v2720_v19 }
 0x604   :  { %v1199_v35 = vpop.f32.mrf.mxu0 }
 0x605   :  { %v1200_v55 = vadd.f32 %v2720_v19, %v1199_v35  ;;  %3745 = vmatprep.mubr.f32.mxu1 %v1260_v31  ;;  %v1263_v61 = vmax.f32 %v1205_v49, 0.0 }
 0x606   :  { %v3697_v57 = vpop.f32.mrf.mxu0  ;;  %3746 = vmatmul.mubr.f32.gmra.mxu1 %v1261_v36 }
 0x607   :  { %v1262_v59 = vmax.f32 %v1200_v55, 0.0  ;;  %v1215_v63 = vadd.f32 %v3697_v57, %v2720_v19 }
 0x608   :  { %v1209_v32 = vpop.f32.mrf.mxu0 }
 0x609   :  { %v1210_v43 = vadd.f32 %v2720_v19, %v1209_v32  ;;  %3748 = vmatprep.mubr.f32.mxu1 %v1262_v59  ;;  %v1265_v42 = vmax.f32 %v1215_v63, 0.0  ;;  %v2754_v59 = vld [vmem:[%s5773_s7 + $0x178] sm:$0xff]  ;;  %v2751_v63 = vld [vmem:[%s5773_s7 + $0x160] sm:$0xff] }
 0x60a   :  { %v3700_v44 = vpop.f32.mrf.mxu0  ;;  %3749 = vmatmul.mubr.f32.gmra.mxu1 %v1263_v61  ;;  %v2753_v61 = vld [vmem:[%s5773_s7 + $0x170] sm:$0xff]  ;;  %3822 = vmatprep.subr.mxu1 %v2754_v59  ;;  %v2750_v32 = vld [vmem:[%s5773_s7 + $0x158] sm:$0xff] }
 0x60b   :  { %v1264_v41 = vmax.f32 %v1210_v43, 0.0  ;;  %v1225_v39 = vadd.f32 %v3700_v44, %v2720_v19  ;;  %3823 = vmatpush3.msra.mxu1 %v2754_v59  ;;  %v2749_v43 = vld [vmem:[%s5773_s7 + $0x150] sm:$0xff]  ;;  %v2748_v44 = vld [vmem:[%s5773_s7 + $0x148] sm:$0xff] }
 0x60c   :  { %v1219_v40 = vpop.f32.mrf.mxu0  ;;  %3824 = vmatprep.subr.mxu1 %v2753_v61 }
 0x60d   :  { %v1220_v37 = vadd.f32 %v2720_v19, %v1219_v40  ;;  %3751 = vmatprep.mubr.f32.mxu1 %v1264_v41  ;;  %v1267_v33 = vmax.f32 %v1225_v39, 0.0  ;;  %3825 = vmatpush3.msra.mxu1 %v2753_v61  ;;  %v2747_v41 = vld [vmem:[%s5773_s7 + $0x140] sm:$0xff]  ;;  %v2745_v39 = vld [vmem:[%s5773_s7 + $0x130] sm:$0xff]  ;;  %v2744_v40 = vld [vmem:[%s5773_s7 + $0x128] sm:$0xff] }
 0x60e   :  { %v3703_v17 = vpop.f32.mrf.mxu0  ;;  %3752 = vmatmul.mubr.f32.gmra.mxu1 %v1265_v42  ;;  %v2746_v42 = vld [vmem:[%s5773_s7 + $0x138] sm:$0xff] }
 0x60f   :  { %v1266_v18 = vmax.f32 %v1220_v37, 0.0  ;;  %v1235_v20 = vadd.f32 %v3703_v17, %v2720_v19  ;;  %v2743_v37 = vld [vmem:[%s5773_s7 + $0x120] sm:$0xff]  ;;  %v2742_v17 = vld [vmem:[%s5773_s7 + $0x118] sm:$0xff] }
 0x610   :  { %v1229_v21 = vpop.f32.mrf.mxu0 }
 0x611   :  { %v1230_v22 = vadd.f32 %v2720_v19, %v1229_v21  ;;  %3754 = vmatprep.mubr.f32.mxu1 %v1266_v18  ;;  %v1269_v25 = vmax.f32 %v1235_v20, 0.0  ;;  %v2741_v18 = vld [vmem:[%s5773_s7 + $0x110] sm:$0xff] }
 0x612   :  { %v3706_v23 = vpop.f32.mrf.mxu0  ;;  %3755 = vmatmul.mubr.f32.gmra.mxu1 %v1267_v33  ;;  %v2740_v33 = vld [vmem:[%s5773_s7 + $0x108] sm:$0xff] }
 0x613   :  { %v1268_v24 = vmax.f32 %v1230_v22, 0.0  ;;  %v1245_v26 = vadd.f32 %v3706_v23, %v2720_v19 }
 0x614   :  { %v1239_v27 = vpop.f32.mrf.mxu0 }
 0x615   :  { %v1240_v28 = vadd.f32 %v2720_v19, %v1239_v27  ;;  %3757 = vmatprep.mubr.f32.mxu1 %v1268_v24  ;;  %v1271_v31 = vmax.f32 %v1245_v26, 0.0 }
 0x616   :  { %v3709_v29 = vpop.f32.mrf.mxu0  ;;  %3758 = vmatmul.mubr.f32.gmra.mxu1 %v1269_v25 }
 0x617   :  { %v1270_v30 = vmax.f32 %v1240_v28, 0.0  ;;  %v1255_v36 = vadd.f32 %v3709_v29, %v2720_v19 }
 0x618   :  { %v1249_v49 = vpop.f32.mrf.mxu0 }
 0x619   :  { %v1250_v35 = vadd.f32 %v2720_v19, %v1249_v49  ;;  %3760 = vmatprep.mubr.f32.mxu1 %v1270_v30  ;;  %v1273_v57 = vmax.f32 %v1255_v36, 0.0  ;;  %v2752_v19 = vld [vmem:[%s5773_s7 + $0x168] sm:$0xff] }
 0x61a   :  { %3761 = vmatmul.mubr.f32.gmra.mxu1 %v1271_v31  ;;  %3826 = vmatprep.subr.mxu1 %v2752_v19 }
 0x61b   :  { %v1272_v55 = vmax.f32 %v1250_v35, 0.0  ;;  %3827 = vmatpush3.msra.mxu1 %v2752_v19  ;;  %v2738_v35 = vld [vmem:[%s5777_s10 + $0x1] ss:$0 sm:$0xff] }
 0x61c   :  { %3828 = vmatprep.subr.mxu1 %v2751_v63 }
 0x61d   :  { %3763 = vmatprep.mubr.f32.mxu1 %v1272_v55  ;;  %3829 = vmatpush3.msra.mxu1 %v2751_v63 }
 0x61e   :  { %3764 = vmatmul.mubr.f32.gmra.mxu1 %v1273_v57  ;;  %3830 = vmatprep.subr.mxu1 %v2750_v32 }
 0x61f   :  { %3831 = vmatpush3.msra.mxu1 %v2750_v32 }
 0x620   :  { %3832 = vmatprep.subr.mxu1 %v2749_v43 }
 0x621   :  { %3833 = vmatpush3.msra.mxu1 %v2749_v43 }
 0x622   :  { %3834 = vmatprep.subr.mxu1 %v2748_v44 }
 0x623   :  { %3835 = vmatpush3.msra.mxu1 %v2748_v44 }
 0x624   :  { %3836 = vmatprep.subr.mxu1 %v2747_v41 }
 0x625   :  { %3837 = vmatpush3.msra.mxu1 %v2747_v41 }
 0x626   :  { %3838 = vmatprep.subr.mxu1 %v2746_v42 }
 0x627   :  { %3839 = vmatpush3.msra.mxu1 %v2746_v42 }
 0x628   :  { %3840 = vmatprep.subr.mxu1 %v2745_v39 }
 0x629   :  { %3841 = vmatpush3.msra.mxu1 %v2745_v39 }
 0x62a   :  { %3842 = vmatprep.subr.mxu1 %v2744_v40 }
 0x62b   :  { %3843 = vmatpush3.msra.mxu1 %v2744_v40 }
 0x62c   :  { %3844 = vmatprep.subr.mxu1 %v2743_v37 }
 0x62d   :  { %3845 = vmatpush3.msra.mxu1 %v2743_v37 }
 0x62e   :  { %3846 = vmatprep.subr.mxu1 %v2742_v17 }
 0x62f   :  { %3847 = vmatpush3.msra.mxu1 %v2742_v17 }
 0x630   :  { %3848 = vmatprep.subr.mxu1 %v2741_v18 }
 0x631   :  { %3849 = vmatpush3.msra.mxu1 %v2741_v18 }
 0x632   :  { %3850 = vmatprep.subr.mxu1 %v2740_v33 }
 0x633   :  { %3851 = vmatpush3.msra.mxu1 %v2740_v33 }
 0x6c2   :  { %v4951_v20 = vpop.f32.mrf.mxu1 }
 0x6c4   :  { %v4953_v21 = vpop.f32.mrf.mxu1 }
 0x6c6   :  { %v3747_v22 = vpop.f32.mrf.mxu1 }
 0x6c8   :  { %v1375_v23 = vpop.f32.mrf.mxu1 }
 0x6ca   :  { %v3750_v24 = vpop.f32.mrf.mxu1 }
 0x6cc   :  { %v1385_v25 = vpop.f32.mrf.mxu1 }
 0x6ce   :  { %v3753_v26 = vpop.f32.mrf.mxu1 }
 0x6cf   :  { %v1401_v33 = vadd.f32 %v3753_v26, %v2738_v35  ;;  %v1386_v26 = vadd.f32 %v2738_v35, %v1385_v25  ;;  %v1371_v25 = vadd.f32 %v4951_v20, %v2738_v35 }
 0x6d0   :  { %v1395_v27 = vpop.f32.mrf.mxu1 }
 0x6d2   :  { %v3756_v28 = vpop.f32.mrf.mxu1 }
 0x6d3   :  { %v1411_v40 = vadd.f32 %v3756_v28, %v2738_v35  ;;  %v1396_v28 = vadd.f32 %v2738_v35, %v1395_v27  ;;  %v1381_v27 = vadd.f32 %v3747_v22, %v2738_v35  ;;  %v1366_v22 = vadd.f32 %v2738_v35, %v4953_v21  ;;  %v4216_v21 = vld [vmem:[%s5772_s1 + $0x8] sm:$0xff] }
 0x6d4   :  { %v1405_v29 = vpop.f32.mrf.mxu1 }
 0x6d5   :  { %v1406_v17 = vadd.f32 %v2738_v35, %v1405_v29  ;;  %v1391_v29 = vadd.f32 %v3750_v24, %v2738_v35  ;;  %v1376_v24 = vadd.f32 %v2738_v35, %v1375_v23  ;;  %v5014_v23 = vmax.f32 %v1371_v25, 0.0  ;;  %v4230_v25 = vld [vmem:[%s5772_s1 + $0x78] sm:$0xff] }
 0x6d6   :  { %v3759_v30 = vpop.f32.mrf.mxu1  ;;  %v5018_v20 = vmax.f32 %v1366_v22, 0.0  ;;  %v2739_v22 = vld [vmem:[%s5773_s7 + $0x100] sm:$0xff] }
 0x6d7   :  { %v1421_v44 = vadd.f32 %v3759_v30, %v2738_v35  ;;  %v4980_v30 = vmax.f32 %v1411_v40, 0.0  ;;  %v4222_v40 = vld [vmem:[%s5772_s1 + $0x38] sm:$0xff]  ;;  %3852 = vmatprep.subr.mxu1 %v2739_v22 }
 0x6d8   :  { %v1415_v31 = vpop.f32.mrf.mxu1  ;;  %3853 = vmatpush3.msra.mxu1 %v2739_v22 }
 0x6d9   :  { %v1416_v42 = vadd.f32 %v2738_v35, %v1415_v31  ;;  %v4972_v37 = vmax.f32 %v1421_v44, 0.0  ;;  %v4984_v31 = vmax.f32 %v1406_v17, 0.0  ;;  %v4220_v44 = vld [vmem:[%s5772_s1 + $0x28] sm:$0xff]  ;;  %v4223_v17 = vld [vmem:[%s5772_s1 + $0x40] sm:$0xff] }
 0x6da   :  { %v3762_v36 = vpop.f32.mrf.mxu1 }
 0x6db   :  { %v1431_v61 = vadd.f32 %v3762_v36, %v2738_v35  ;;  %v4976_v18 = vmax.f32 %v1416_v42, 0.0  ;;  %v4988_v36 = vmax.f32 %v1401_v33, 0.0  ;;  %v4221_v42 = vld [vmem:[%s5772_s1 + $0x30] sm:$0xff]  ;;  %v4224_v33 = vld [vmem:[%s5772_s1 + $0x48] sm:$0xff] }
 0x6dc   :  { %v1425_v49 = vpop.f32.mrf.mxu1 }
 0x6dd   :  { %v1426_v32 = vadd.f32 %v2738_v35, %v1425_v49  ;;  %v4964_v41 = vmax.f32 %v1431_v61, 0.0  ;;  %v4992_v49 = vmax.f32 %v1396_v28, 0.0  ;;  %v5010_v61 = vmax.f32 %v1376_v24, 0.0  ;;  %v4225_v28 = vld [vmem:[%s5772_s1 + $0x50] sm:$0xff] }
 0x6de   :  { %v3765_v55 = vpop.f32.mrf.mxu1  ;;  %v4229_v24 = vld [vmem:[%s5772_s1 + $0x70] sm:$0xff] }
 0x6df   :  { %v1441_v57 = vadd.f32 %v3765_v55, %v2738_v35  ;;  %v4968_v39 = vmax.f32 %v1426_v32, 0.0  ;;  %v4996_v55 = vmax.f32 %v1391_v29, 0.0  ;;  %v4219_v32 = vld [vmem:[%s5772_s1 + $0x20] sm:$0xff]  ;;  %v4226_v29 = vld [vmem:[%s5772_s1 + $0x58] sm:$0xff] }
 0x6e0   :  { %v1435_v59 = vpop.f32.mrf.mxu1 }
 0x6e1   :  { %v4958_v19 = vmax.f32 %v1441_v57, 0.0  ;;  %v1436_v63 = vadd.f32 %v2738_v35, %v1435_v59  ;;  %v5000_v57 = vmax.f32 %v1386_v26, 0.0  ;;  %v5005_v59 = vmax.f32 %v1381_v27, 0.0  ;;  %v4217_v35 = vld [vmem:[%s5772_s1 + $0x10] sm:$0xff]  ;;  %v4227_v26 = vld [vmem:[%s5772_s1 + $0x60] sm:$0xff]  ;;  %v4228_v27 = vld [vmem:[%s5772_s1 + $0x68] sm:$0xff] }
 0x6e3   :  { %v4960_v43 = vmax.f32 %v1436_v63, 0.0  ;;  %3766 = vmatprep.subr.mxu0 %v4958_v19  ;;  %v4218_v63 = vld [vmem:[%s5772_s1 + $0x18] sm:$0xff] }
 0x6e4   :  { %3767 = vmatpush3.msra.mxu0 %v4958_v19 }
 0x6e5   :  { %3768 = vmatprep.subr.mxu0 %v4960_v43 }
 0x6e6   :  { %3769 = vmatpush3.msra.mxu0 %v4960_v43 }
 0x6e7   :  { %3770 = vmatprep.subr.mxu0 %v4964_v41 }
 0x6e8   :  { %3771 = vmatpush3.msra.mxu0 %v4964_v41 }
 0x6e9   :  { %3772 = vmatprep.subr.mxu0 %v4968_v39 }
 0x6ea   :  { %3773 = vmatpush3.msra.mxu0 %v4968_v39 }
 0x6eb   :  { %3774 = vmatprep.subr.mxu0 %v4972_v37 }
 0x6ec   :  { %3775 = vmatpush3.msra.mxu0 %v4972_v37 }
 0x6ed   :  { %3776 = vmatprep.subr.mxu0 %v4976_v18 }
 0x6ee   :  { %3777 = vmatpush3.msra.mxu0 %v4976_v18 }
 0x6ef   :  { %3778 = vmatprep.subr.mxu0 %v4980_v30 }
 0x6f0   :  { %3779 = vmatpush3.msra.mxu0 %v4980_v30 }
 0x6f1   :  { %3780 = vmatprep.subr.mxu0 %v4984_v31 }
 0x6f2   :  { %3781 = vmatpush3.msra.mxu0 %v4984_v31 }
 0x6f3   :  { %3782 = vmatprep.subr.mxu0 %v4988_v36 }
 0x6f4   :  { %3783 = vmatpush3.msra.mxu0 %v4988_v36 }
 0x6f5   :  { %3784 = vmatprep.subr.mxu0 %v4992_v49 }
 0x6f6   :  { %3785 = vmatpush3.msra.mxu0 %v4992_v49 }
 0x6f7   :  { %3786 = vmatprep.subr.mxu0 %v4996_v55 }
 0x6f8   :  { %3787 = vmatpush3.msra.mxu0 %v4996_v55 }
 0x6f9   :  { %3788 = vmatprep.subr.mxu0 %v5000_v57 }
 0x6fa   :  { %3789 = vmatpush3.msra.mxu0 %v5000_v57 }
 0x6fb   :  { %3790 = vmatprep.subr.mxu0 %v5005_v59 }
 0x6fc   :  { %3791 = vmatpush3.msra.mxu0 %v5005_v59 }
 0x6fd   :  { %3792 = vmatprep.subr.mxu0 %v5010_v61 }
 0x6fe   :  { %3793 = vmatpush3.msra.mxu0 %v5010_v61 }
 0x6ff   :  { %3794 = vmatprep.subr.mxu0 %v5014_v23 }
 0x700   :  { %3795 = vmatpush3.msra.mxu0 %v5014_v23 }
 0x701   :  { %3796 = vmatprep.subr.mxu0 %v5018_v20 }
 0x702   :  { %3797 = vmatpush3.msra.mxu0 %v5018_v20 }
 0x703   :  { %3799 = vmatmul.mubr.f32.vlgmr.msra.gmra.mxu0 %v4216_v21  ;;  %v4231_v21 = vmov 0.0  }
 0x704   :  { %3801 = vmatprep.mubr.f32.mxu0 %v4217_v35  ;;  %3934 = vmatprep.subr.mxu1 %v4231_v21  ;;  %v2772_v35 = vld [vmem:[%s5775_s9 + $0x178] sm:$0xff] }
 0x705   :  { %3878 = vmatprep.subr.mxu0 %v2772_v35 }
 0x706   :  { %3879 = vmatpush3.msra.mxu0 %v2772_v35 }
 0x707   :  { %3802 = vmatmul.mubr.f32.gmra.mxu0 %v4218_v63  ;;  %v2771_v63 = vld [vmem:[%s5775_s9 + $0x170] sm:$0xff] }
 0x708   :  { %3804 = vmatprep.mubr.f32.mxu0 %v4219_v32  ;;  %v2770_v32 = vld [vmem:[%s5775_s9 + $0x168] sm:$0xff]  ;;  %3880 = vmatprep.subr.mxu0 %v2771_v63 }
 0x709   :  { %3881 = vmatpush3.msra.mxu0 %v2771_v63 }
 0x70a   :  { %3882 = vmatprep.subr.mxu0 %v2770_v32 }
 0x70b   :  { %3805 = vmatmul.mubr.f32.gmra.mxu0 %v4220_v44  ;;  %v2769_v44 = vld [vmem:[%s5775_s9 + $0x160] sm:$0xff] }
 0x70c   :  { %3807 = vmatprep.mubr.f32.mxu0 %v4221_v42  ;;  %3883 = vmatpush3.msra.mxu0 %v2770_v32  ;;  %v2768_v42 = vld [vmem:[%s5775_s9 + $0x158] sm:$0xff] }
 0x70d   :  { %3884 = vmatprep.subr.mxu0 %v2769_v44 }
 0x70e   :  { %3885 = vmatpush3.msra.mxu0 %v2769_v44 }
 0x70f   :  { %3808 = vmatmul.mubr.f32.gmra.mxu0 %v4222_v40  ;;  %v2767_v40 = vld [vmem:[%s5775_s9 + $0x150] sm:$0xff]  ;;  %3886 = vmatprep.subr.mxu0 %v2768_v42 }
 0x710   :  { %3810 = vmatprep.mubr.f32.mxu0 %v4223_v17  ;;  %3887 = vmatpush3.msra.mxu0 %v2768_v42  ;;  %v2766_v17 = vld [vmem:[%s5775_s9 + $0x148] sm:$0xff] }
 0x711   :  { %3888 = vmatprep.subr.mxu0 %v2767_v40 }
 0x712   :  { %3889 = vmatpush3.msra.mxu0 %v2767_v40 }
 0x713   :  { %3811 = vmatmul.mubr.f32.gmra.mxu0 %v4224_v33  ;;  %v2765_v33 = vld [vmem:[%s5775_s9 + $0x140] sm:$0xff]  ;;  %3890 = vmatprep.subr.mxu0 %v2766_v17 }
 0x714   :  { %3813 = vmatprep.mubr.f32.mxu0 %v4225_v28  ;;  %3891 = vmatpush3.msra.mxu0 %v2766_v17  ;;  %v2764_v28 = vld [vmem:[%s5775_s9 + $0x138] sm:$0xff] }
 0x715   :  { %3892 = vmatprep.subr.mxu0 %v2765_v33 }
 0x716   :  { %3893 = vmatpush3.msra.mxu0 %v2765_v33 }
 0x717   :  { %3814 = vmatmul.mubr.f32.gmra.mxu0 %v4226_v29  ;;  %v2763_v29 = vld [vmem:[%s5775_s9 + $0x130] sm:$0xff]  ;;  %3894 = vmatprep.subr.mxu0 %v2764_v28 }
 0x718   :  { %3816 = vmatprep.mubr.f32.mxu0 %v4227_v26  ;;  %3895 = vmatpush3.msra.mxu0 %v2764_v28  ;;  %v2762_v26 = vld [vmem:[%s5775_s9 + $0x128] sm:$0xff] }
 0x719   :  { %3896 = vmatprep.subr.mxu0 %v2763_v29 }
 0x71a   :  { %3897 = vmatpush3.msra.mxu0 %v2763_v29 }
 0x71b   :  { %3817 = vmatmul.mubr.f32.gmra.mxu0 %v4228_v27  ;;  %v2761_v27 = vld [vmem:[%s5775_s9 + $0x120] sm:$0xff]  ;;  %3898 = vmatprep.subr.mxu0 %v2762_v26 }
 0x71c   :  { %3819 = vmatprep.mubr.f32.mxu0 %v4229_v24  ;;  %3899 = vmatpush3.msra.mxu0 %v2762_v26 }
 0x71d   :  { %3900 = vmatprep.subr.mxu0 %v2761_v27 }
 0x71e   :  { %3901 = vmatpush3.msra.mxu0 %v2761_v27 }
 0x71f   :  { %3820 = vmatmul.mubr.f32.gmra.mxu0 %v4230_v25 }
 0x7c3   :  { %v3800_v24 = vpop.f32.mrf.mxu0 }
 0x7c5   :  { %v1526_v25 = vpop.f32.mrf.mxu0 }
 0x7c6   :  { %3854 = vmatprep.mubr.f32.mxu1 %v1526_v25 }
 0x7c7   :  { %v3803_v22 = vpop.f32.mrf.mxu0  ;;  %3855 = vmatmul.mubr.f32.vlgmr.msra.gmra.mxu1 %v3800_v24 }
 0x7c8   :  { %3935 = vmatpush3.msra.mxu1 %v4506_v0 }
 0x7c9   :  { %3936 = vmatprep.subr.mxu1 %v4231_v21  ;;  %v1536_v35 = vpop.f32.mrf.mxu0 }
 0x7ca   :  { %3937 = vmatpush3.msra.mxu1 %v4508_v2  ;;  %3857 = vmatprep.mubr.f32.mxu1 %v1536_v35 }
 0x7cb   :  { %3938 = vmatprep.subr.mxu1 %v4231_v21  ;;  %v3806_v63 = vpop.f32.mrf.mxu0  ;;  %3858 = vmatmul.mubr.f32.gmra.mxu1 %v3803_v22 }
 0x7cc   :  { %3939 = vmatpush3.msra.mxu1 %v4512_v3 }
 0x7cd   :  { %3940 = vmatprep.subr.mxu1 %v4231_v21  ;;  %v1546_v32 = vpop.f32.mrf.mxu0 }
 0x7ce   :  { %3941 = vmatpush3.msra.mxu1 %v4516_v4  ;;  %3860 = vmatprep.mubr.f32.mxu1 %v1546_v32 }
 0x7cf   :  { %3942 = vmatprep.subr.mxu1 %v4231_v21  ;;  %v3809_v0 = vpop.f32.mrf.mxu0  ;;  %3861 = vmatmul.mubr.f32.gmra.mxu1 %v3806_v63 }
 0x7d0   :  { %3943 = vmatpush3.msra.mxu1 %v4520_v5 }
 0x7d1   :  { %3944 = vmatprep.subr.mxu1 %v4231_v21  ;;  %v1556_v2 = vpop.f32.mrf.mxu0 }
 0x7d2   :  { %3945 = vmatpush3.msra.mxu1 %v4524_v6  ;;  %3863 = vmatprep.mubr.f32.mxu1 %v1556_v2 }
 0x7d3   :  { %3946 = vmatprep.subr.mxu1 %v4231_v21  ;;  %v3812_v3 = vpop.f32.mrf.mxu0  ;;  %3864 = vmatmul.mubr.f32.gmra.mxu1 %v3809_v0 }
 0x7d4   :  { %3947 = vmatpush3.msra.mxu1 %v4528_v7 }
 0x7d5   :  { %3948 = vmatprep.subr.mxu1 %v4231_v21  ;;  %v1566_v4 = vpop.f32.mrf.mxu0 }
 0x7d6   :  { %3949 = vmatpush3.msra.mxu1 %v4532_v8  ;;  %3866 = vmatprep.mubr.f32.mxu1 %v1566_v4 }
 0x7d7   :  { %3950 = vmatprep.subr.mxu1 %v4231_v21  ;;  %v3815_v5 = vpop.f32.mrf.mxu0  ;;  %3867 = vmatmul.mubr.f32.gmra.mxu1 %v3812_v3 }
 0x7d8   :  { %3951 = vmatpush3.msra.mxu1 %v4536_v9 }
 0x7d9   :  { %3952 = vmatprep.subr.mxu1 %v4231_v21  ;;  %v1576_v6 = vpop.f32.mrf.mxu0 }
 0x7da   :  { %3953 = vmatpush3.msra.mxu1 %v4540_v10  ;;  %3869 = vmatprep.mubr.f32.mxu1 %v1576_v6 }
 0x7db   :  { %3954 = vmatprep.subr.mxu1 %v4231_v21  ;;  %v3818_v7 = vpop.f32.mrf.mxu0  ;;  %3870 = vmatmul.mubr.f32.gmra.mxu1 %v3815_v5 }
 0x7dc   :  { %3955 = vmatpush3.msra.mxu1 %v4544_v11  ;;  %v2760_v11 = vld [vmem:[%s5775_s9 + $0x118] sm:$0xff] }
 0x7dd   :  { %3956 = vmatprep.subr.mxu1 %v4231_v21  ;;  %v1586_v8 = vpop.f32.mrf.mxu0  ;;  %3902 = vmatprep.subr.mxu0 %v2760_v11 }
 0x7de   :  { %3957 = vmatpush3.msra.mxu1 %v4548_v12  ;;  %3872 = vmatprep.mubr.f32.mxu1 %v1586_v8  ;;  %v2759_v12 = vld [vmem:[%s5775_s9 + $0x110] sm:$0xff] }
 0x7df   :  { %3958 = vmatprep.subr.mxu1 %v4231_v21  ;;  %v3821_v9 = vpop.f32.mrf.mxu0  ;;  %3873 = vmatmul.mubr.f32.gmra.mxu1 %v3818_v7 }
 0x7e0   :  { %3959 = vmatpush3.msra.mxu1 %v4552_v13  ;;  %3903 = vmatpush3.msra.mxu0 %v2760_v11  ;;  %v2758_v13 = vld [vmem:[%s5775_s9 + $0x108] sm:$0xff] }
 0x7e1   :  { %3960 = vmatprep.subr.mxu1 %v4231_v21  ;;  %v1596_v10 = vpop.f32.mrf.mxu0  ;;  %3904 = vmatprep.subr.mxu0 %v2759_v12 }
 0x7e2   :  { %3961 = vmatpush3.msra.mxu1 %v4556_v14  ;;  %3875 = vmatprep.mubr.f32.mxu1 %v1596_v10  ;;  %v2757_v14 = vld [vmem:[%s5775_s9 + $0x100] sm:$0xff] }
 0x7e3   :  { %3962 = vmatprep.subr.mxu1 %v4231_v21  ;;  %3876 = vmatmul.mubr.f32.gmra.mxu1 %v3821_v9 }
 0x7e4   :  { %3963 = vmatpush3.msra.mxu1 %v4560_v15  ;;  %3905 = vmatpush3.msra.mxu0 %v2759_v12  ;;  %v2756_v15 = vld [vmem:[%s5776_s8 + $0x2] ss:$0 sm:$0xff] }
 0x7e5   :  { %3964 = vmatprep.subr.mxu1 %v4231_v21  ;;  %3906 = vmatprep.subr.mxu0 %v2758_v13 }
 0x7e6   :  { %3965 = vmatpush3.msra.mxu1 %v4564_v16  ;;  %3907 = vmatpush3.msra.mxu0 %v2758_v13 }
 0x7e7   :  { %4004 = vmatprep.subr.mxu1 %v4231_v21  ;;  %3908 = vmatprep.subr.mxu0 %v2757_v14 }
 0x7e8   :  { %3909 = vmatpush3.msra.mxu0 %v2757_v14  ;;  %3966 = vmatprep.mubr.msk.f32.mxu1 %vm4232_vm0, %v4231_v21 }
 0x7e9   :  { %3969 = vmatprep.subr.mxu0 %v4231_v21 }
 0x887   :  { %v3856_v16 = vpop.f32.mrf.mxu1 }
 0x888   :  { %v1702_v44 = vadd.f32 %v3856_v16, %v2756_v15 }
 0x889   :  { %v1696_v42 = vpop.f32.mrf.mxu1 }
 0x88a   :  { %v1697_v40 = vadd.f32 %v2756_v15, %v1696_v42  ;;  %v1776_v28 = vmax.f32 %v1702_v44, 0.0 }
 0x88b   :  { %v3859_v17 = vpop.f32.mrf.mxu1 }
 0x88c   :  { %v1775_v33 = vmax.f32 %v1697_v40, 0.0  ;;  %v1712_v29 = vadd.f32 %v3859_v17, %v2756_v15 }
 0x88d   :  { %v1706_v26 = vpop.f32.mrf.mxu1 }
 0x88e   :  { %v1707_v27 = vadd.f32 %v2756_v15, %v1706_v26  ;;  %3910 = vmatprep.mubr.f32.mxu0 %v1775_v33  ;;  %v1778_v22 = vmax.f32 %v1712_v29, 0.0 }
 0x88f   :  { %v3862_v24 = vpop.f32.mrf.mxu1  ;;  %3911 = vmatmul.mubr.f32.vlgmr.msra.gmra.mxu0 %v1776_v28 }
 0x890   :  { %v1777_v25 = vmax.f32 %v1707_v27, 0.0  ;;  %v1722_v35 = vadd.f32 %v3862_v24, %v2756_v15 }
 0x891   :  { %v1716_v63 = vpop.f32.mrf.mxu1 }
 0x892   :  { %v1717_v32 = vadd.f32 %v2756_v15, %v1716_v63  ;;  %3913 = vmatprep.mubr.f32.mxu0 %v1777_v25  ;;  %v1780_v3 = vmax.f32 %v1722_v35, 0.0 }
 0x893   :  { %v3865_v0 = vpop.f32.mrf.mxu1  ;;  %3914 = vmatmul.mubr.f32.gmra.mxu0 %v1778_v22 }
 0x894   :  { %v1779_v2 = vmax.f32 %v1717_v32, 0.0  ;;  %v1732_v4 = vadd.f32 %v3865_v0, %v2756_v15 }
 0x895   :  { %v1726_v5 = vpop.f32.mrf.mxu1 }
 0x896   :  { %v1727_v6 = vadd.f32 %v2756_v15, %v1726_v5  ;;  %3916 = vmatprep.mubr.f32.mxu0 %v1779_v2  ;;  %v1782_v9 = vmax.f32 %v1732_v4, 0.0 }
 0x897   :  { %v3868_v7 = vpop.f32.mrf.mxu1  ;;  %3917 = vmatmul.mubr.f32.gmra.mxu0 %v1780_v3  ;;  %v5162_v3 = vld [vmem:[%s5778_s2] sm:$0xff] }
 0x898   :  { %v1781_v8 = vmax.f32 %v1727_v6, 0.0  ;;  %v1742_v10 = vadd.f32 %v3868_v7, %v2756_v15  ;;  %3967 = vmatmul.mubr.f32.vlgmr.msra.gmra.mxu1 %v5162_v3 }
 0x899   :  { %v1736_v11 = vpop.f32.mrf.mxu1  ;;  %4036 = vmatprep.mubr.msk.f32.mxu1 %vm4232_vm0, %v4231_v21 }
 0x89a   :  { %v1737_v12 = vadd.f32 %v2756_v15, %v1736_v11  ;;  %3919 = vmatprep.mubr.f32.mxu0 %v1781_v8  ;;  %v1784_v16 = vmax.f32 %v1742_v10, 0.0  ;;  %v1978_v8 = vadd.f32 %v5014_v23, %v4823_v38  ;;  %v2111_v10 = vld [vmem:[%s5779_s11 + $0x78] sm:$0xff]  ;;  %v2110_v11 = vld [vmem:[%s5779_s11 + $0x70] sm:$0xff]  ;;  %v1977_v38 = vadd.f32 %v5018_v20, %v4827_v34 }
 0x89b   :  { %v3871_v13 = vpop.f32.mrf.mxu1  ;;  %3920 = vmatmul.mubr.f32.gmra.mxu0 %v1782_v9 }
 0x89c   :  { %v1783_v14 = vmax.f32 %v1737_v12, 0.0  ;;  %v1752_v44 = vadd.f32 %v3871_v13, %v2756_v15  ;;  %3970 = vmatpush3.msra.mxu0 %v2111_v10  ;;  %v2105_v10 = vld [vmem:[%s5779_s11 + $0x48] sm:$0xff] }
 0x89d   :  { %v1746_v42 = vpop.f32.mrf.mxu1  ;;  %3971 = vmatprep.subr.mxu0 %v4231_v21 }
 0x89e   :  { %v1747_v40 = vadd.f32 %v2756_v15, %v1746_v42  ;;  %3922 = vmatprep.mubr.f32.mxu0 %v1783_v14  ;;  %v1786_v28 = vmax.f32 %v1752_v44, 0.0  ;;  %v2109_v44 = vld [vmem:[%s5779_s11 + $0x68] sm:$0xff]  ;;  %3972 = vmatpush3.msra.mxu0 %v2110_v11 }
 0x89f   :  { %v3874_v17 = vpop.f32.mrf.mxu1  ;;  %3923 = vmatmul.mubr.f32.gmra.mxu0 %v1784_v16  ;;  %3973 = vmatprep.subr.mxu0 %v4231_v21 }
 0x8a0   :  { %v1785_v33 = vmax.f32 %v1747_v40, 0.0  ;;  %v1762_v29 = vadd.f32 %v3874_v17, %v2756_v15  ;;  %v1980_v17 = vadd.f32 %v5005_v59, %v4814_v52  ;;  %3974 = vmatpush3.msra.mxu0 %v2109_v44 }
 0x8a1   :  { %v1756_v26 = vpop.f32.mrf.mxu1  ;;  %3975 = vmatprep.subr.mxu0 %v4231_v21 }
 0x8a2   :  { %v1757_v27 = vadd.f32 %v2756_v15, %v1756_v26  ;;  %3925 = vmatprep.mubr.f32.mxu0 %v1785_v33  ;;  %v1788_v22 = vmax.f32 %v1762_v29, 0.0 }
 0x8a3   :  { %v3877_v24 = vpop.f32.mrf.mxu1  ;;  %3926 = vmatmul.mubr.f32.gmra.mxu0 %v1786_v28  ;;  %v2108_v28 = vld [vmem:[%s5779_s11 + $0x60] sm:$0xff] }
 0x8a4   :  { %v1787_v25 = vmax.f32 %v1757_v27, 0.0  ;;  %v1772_v35 = vadd.f32 %v3877_v24, %v2756_v15  ;;  %v1979_v27 = vadd.f32 %v5010_v61, %v4819_v53  ;;  %3976 = vmatpush3.msra.mxu0 %v2108_v28 }
 0x8a5   :  { %v1766_v63 = vpop.f32.mrf.mxu1  ;;  %3977 = vmatprep.subr.mxu0 %v4231_v21 }
 0x8a6   :  { %v1767_v32 = vadd.f32 %v2756_v15, %v1766_v63  ;;  %3928 = vmatprep.mubr.f32.mxu0 %v1787_v25  ;;  %v1790_v2 = vmax.f32 %v1772_v35, 0.0  ;;  %v5172_v15 = vld [vmem:[%s5777_s10 + $0x2] ss:$0 sm:$0xff]  ;;  %v2107_v25 = vld [vmem:[%s5779_s11 + $0x58] sm:$0xff]  ;;  %v1982_v63 = vadd.f32 %v4996_v55, %v4805_v50 }
 0x8a7   :  { %3929 = vmatmul.mubr.f32.gmra.mxu0 %v1788_v22 }
 0x8a8   :  { %v1789_v0 = vmax.f32 %v1767_v32, 0.0  ;;  %3978 = vmatpush3.msra.mxu0 %v2107_v25  ;;  %v2103_v25 = vld [vmem:[%s5779_s11 + $0x38] sm:$0xff] }
 0x8a9   :  { %3979 = vmatprep.subr.mxu0 %v4231_v21 }
 0x8aa   :  { %3931 = vmatprep.mubr.f32.mxu0 %v1789_v0  ;;  %v2106_v0 = vld [vmem:[%s5779_s11 + $0x50] sm:$0xff] }
 0x8ab   :  { %3932 = vmatmul.mubr.f32.gmra.mxu0 %v1790_v2 }
 0x8ac   :  { %4001 = vmatprep.mubr.msk.f32.mxu0 %vm4232_vm0, %v4231_v21  ;;  %3980 = vmatpush3.msra.mxu0 %v2106_v0  ;;  %v1986_v0 = vadd.f32 %v4980_v30, %v4789_v45 }
 0x8ad   :  { %3981 = vmatprep.subr.mxu0 %v4231_v21 }
 0x8ae   :  { %3982 = vmatpush3.msra.mxu0 %v2105_v10 }
 0x8af   :  { %3983 = vmatprep.subr.mxu0 %v4231_v21 }
 0x94f   :  { %v3912_v4 = vpop.f32.mrf.mxu0 }
 0x950   :  { %v5175_v5 = vadd.f32 %v3912_v4, %v5172_v15 }
 0x951   :  { %v1882_v6 = vpop.f32.mrf.mxu0 }
 0x952   :  { %v5784_v7 = vmax.f32 %v5175_v5, 0.0  ;;  %v5181_v9 = vadd.f32 %v5172_v15, %v1882_v6  ;;  %v1981_v6 = vadd.f32 %v5000_v57, %v4809_v51 }
 0x953   :  { %v3915_v12 = vpop.f32.mrf.mxu0 }
 0x954   :  { %v5191_v13 = vadd.f32 %v1978_v8, %v5784_v7  ;;  %v5783_v14 = vmax.f32 %v5181_v9, 0.0  ;;  %v5197_v16 = vadd.f32 %v3915_v12, %v5172_v15 }
 0x955   :  { %v1892_v42 = vpop.f32.mrf.mxu0 }
 0x956   :  { %2010 = vst [vmem:[%s5780_s13 + $0x8] sm:$0xff] %v5191_v13  ;;  %v5209_v40 = vadd.f32 %v1977_v38, %v5783_v14  ;;  %v5786_v34 = vmax.f32 %v5197_v16, 0.0  ;;  %v5215_v33 = vadd.f32 %v5172_v15, %v1892_v42  ;;  %v1984_v38 = vadd.f32 %v4988_v36, %v4797_v47  ;;  %v2104_v42 = vld [vmem:[%s5779_s11 + $0x40] sm:$0xff] }
 0x957   :  { %v3918_v29 = vpop.f32.mrf.mxu0  ;;  %3984 = vmatpush3.msra.mxu0 %v2104_v42 }
 0x958   :  { %2009 = vst [vmem:[%s5780_s13] sm:$0xff] %v5209_v40  ;;  %v5227_v26 = vadd.f32 %v1980_v17, %v5786_v34  ;;  %v5785_v52 = vmax.f32 %v5215_v33, 0.0  ;;  %v5233_v24 = vadd.f32 %v3918_v29, %v5172_v15  ;;  %v1983_v29 = vadd.f32 %v4992_v49, %v4801_v48  ;;  %3985 = vmatprep.subr.mxu0 %v4231_v21 }
 0x959   :  { %v1902_v22 = vpop.f32.mrf.mxu0  ;;  %3986 = vmatpush3.msra.mxu0 %v2103_v25 }
 0x95a   :  { %2012 = vst [vmem:[%s5780_s13 + $0x18] sm:$0xff] %v5227_v26  ;;  %v5245_v35 = vadd.f32 %v1979_v27, %v5785_v52  ;;  %v5788_v53 = vmax.f32 %v5233_v24, 0.0  ;;  %v5251_v32 = vadd.f32 %v5172_v15, %v1902_v22  ;;  %3987 = vmatprep.subr.mxu0 %v4231_v21 }
 0x95b   :  { %v3921_v2 = vpop.f32.mrf.mxu0 }
 0x95c   :  { %2011 = vst [vmem:[%s5780_s13 + $0x10] sm:$0xff] %v5245_v35  ;;  %v5263_v4 = vadd.f32 %v1982_v63, %v5788_v53  ;;  %v5787_v50 = vmax.f32 %v5251_v32, 0.0  ;;  %v5269_v8 = vadd.f32 %v3921_v2, %v5172_v15 }
 0x95d   :  { %v1912_v11 = vpop.f32.mrf.mxu0 }
 0x95e   :  { %2014 = vst [vmem:[%s5780_s13 + $0x28] sm:$0xff] %v5263_v4  ;;  %v5281_v12 = vadd.f32 %v1981_v6, %v5787_v50  ;;  %v5790_v51 = vmax.f32 %v5269_v8, 0.0  ;;  %v5287_v44 = vadd.f32 %v5172_v15, %v1912_v11  ;;  %v2102_v6 = vld [vmem:[%s5779_s11 + $0x30] sm:$0xff] }
 0x95f   :  { %v3924_v17 = vpop.f32.mrf.mxu0  ;;  %3988 = vmatpush3.msra.mxu0 %v2102_v6  ;;  %v2100_v6 = vld [vmem:[%s5779_s11 + $0x20] sm:$0xff] }
 0x960   :  { %2013 = vst [vmem:[%s5780_s13 + $0x20] sm:$0xff] %v5281_v12  ;;  %v5299_v28 = vadd.f32 %v1984_v38, %v5790_v51  ;;  %v5789_v47 = vmax.f32 %v5287_v44, 0.0  ;;  %v5305_v27 = vadd.f32 %v3924_v17, %v5172_v15  ;;  %v1985_v38 = vadd.f32 %v4984_v31, %v4793_v46  ;;  %v2101_v17 = vld [vmem:[%s5779_s11 + $0x28] sm:$0xff]  ;;  %3989 = vmatprep.subr.mxu0 %v4231_v21 }
 0x961   :  { %v1922_v22 = vpop.f32.mrf.mxu0  ;;  %3990 = vmatpush3.msra.mxu0 %v2101_v17  ;;  %v2099_v17 = vld [vmem:[%s5779_s11 + $0x18] sm:$0xff] }
 0x962   :  { %2016 = vst [vmem:[%s5780_s13 + $0x38] sm:$0xff] %v5299_v28  ;;  %v5317_v63 = vadd.f32 %v1983_v29, %v5789_v47  ;;  %v1970_v48 = vmax.f32 %v5305_v27, 0.0  ;;  %v5323_v2 = vadd.f32 %v5172_v15, %v1922_v22  ;;  %v1988_v22 = vadd.f32 %v4972_v37, %v4781_v62  ;;  %3991 = vmatprep.subr.mxu0 %v4231_v21  ;;  %v2798_v27 = vld [vmem:[%s5779_s11 + $0x120] sm:$0xff] }
 0x963   :  { %v3927_v10 = vpop.f32.mrf.mxu0  ;;  %3992 = vmatpush3.msra.mxu0 %v2100_v6  ;;  %v2098_v6 = vld [vmem:[%s5779_s11 + $0x10] sm:$0xff] }
 0x964   :  { %2015 = vst [vmem:[%s5780_s13 + $0x30] sm:$0xff] %v5317_v63  ;;  %v5335_v11 = vadd.f32 %v1986_v0, %v1970_v48  ;;  %v1969_v45 = vmax.f32 %v5323_v2, 0.0  ;;  %v5341_v42 = vadd.f32 %v3927_v10, %v5172_v15  ;;  %3993 = vmatprep.subr.mxu0 %v4231_v21  ;;  %v2795_v2 = vld [vmem:[%s5779_s11 + $0x108] sm:$0xff] }
 0x965   :  { %v1932_v29 = vpop.f32.mrf.mxu0  ;;  %3994 = vmatpush3.msra.mxu0 %v2099_v17  ;;  %v2097_v17 = vld [vmem:[%s5779_s11 + $0x8] sm:$0xff] }
 0x966   :  { %2018 = vst [vmem:[%s5780_s13 + $0x48] sm:$0xff] %v5335_v11  ;;  %v5353_v25 = vadd.f32 %v1985_v38, %v1969_v45  ;;  %v1972_v46 = vmax.f32 %v5341_v42, 0.0  ;;  %v5359_v0 = vadd.f32 %v5172_v15, %v1932_v29  ;;  %v1987_v29 = vadd.f32 %v4976_v18, %v4785_v1  ;;  %3995 = vmatprep.subr.mxu0 %v4231_v21 }
 0x967   :  { %v3930_v10 = vpop.f32.mrf.mxu0  ;;  %3996 = vmatpush3.msra.mxu0 %v2098_v6  ;;  %v2096_v6 = vld [vmem:[%s5779_s11] sm:$0xff] }
 0x968   :  { %2017 = vst [vmem:[%s5780_s13 + $0x40] sm:$0xff] %v5353_v25  ;;  %v2004_v38 = vadd.f32 %v1988_v22, %v1972_v46  ;;  %v1971_v62 = vmax.f32 %v5359_v0, 0.0  ;;  %v5375_v14 = vadd.f32 %v3930_v10, %v5172_v15  ;;  %v1990_v10 = vadd.f32 %v4964_v41, %v4773_v58  ;;  %3997 = vmatprep.subr.mxu0 %v4231_v21 }
 0x969   :  { %v1942_v7 = vpop.f32.mrf.mxu0  ;;  %3998 = vmatpush3.msra.mxu0 %v2097_v17  ;;  %v2820_v17 = vld [vmem:[%s5779_s11 + $0x1c0] sm:$0xff] }
 0x96a   :  { %2020 = vst [vmem:[%s5780_s13 + $0x58] sm:$0xff] %v2004_v38  ;;  %v2003_v22 = vadd.f32 %v1987_v29, %v1971_v62  ;;  %v1974_v1 = vmax.f32 %v5375_v14, 0.0  ;;  %v5390_v52 = vadd.f32 %v5172_v15, %v1942_v7  ;;  %v1989_v7 = vadd.f32 %v4968_v39, %v4777_v60  ;;  %3999 = vmatprep.subr.mxu0 %v4231_v21  ;;  %v2779_v14 = vld [vmem:[%s5779_s11 + $0x98] sm:$0xff] }
 0x96b   :  { %v3933_v34 = vpop.f32.mrf.mxu0  ;;  %4000 = vmatpush3.msra.mxu0 %v2096_v6  ;;  %v2816_v6 = vld [vmem:[%s5779_s11 + $0x1a0] sm:$0xff] }
 0x96c   :  { %2019 = vst [vmem:[%s5780_s13 + $0x50] sm:$0xff] %v2003_v22  ;;  %v2006_v29 = vadd.f32 %v1990_v10, %v1974_v1  ;;  %v1973_v58 = vmax.f32 %v5390_v52, 0.0  ;;  %v5405_v50 = vadd.f32 %v3933_v34, %v5172_v15  ;;  %v1992_v34 = vadd.f32 %v4958_v19, %v4767_v54  ;;  %4039 = vmatprep.subr.mxu0 %v4231_v21 }
 0x96d   :  { %v1952_v53 = vpop.f32.mrf.mxu0  ;;  %v1991_v54 = vadd.f32 %v4960_v43, %v4769_v56  ;;  %v2092_v56 = vpop.f32.mrf.mxu1  ;;  %v5796_v52 = vmax.f32 %v5215_v33, 0.0  ;;  %v5798_v33 = vmax.f32 %v5181_v9, 0.0 }
 0x96e   :  { %2022 = vst [vmem:[%s5780_s13 + $0x68] sm:$0xff] %v2006_v29  ;;  %v2005_v10 = vadd.f32 %v1989_v7, %v1973_v58  ;;  %v1976_v60 = vmax.f32 %v5405_v50, 0.0  ;;  %v5420_v47 = vadd.f32 %v5172_v15, %v1952_v53  ;;  %4002 = vmatmul.mubr.f32.vlgmr.msra.gmra.mxu0 %v2092_v56  ;;  %v2805_v50 = vld [vmem:[%s5779_s11 + $0x158] sm:$0xff]  ;;  %v2812_v56 = vld [vmem:[%s5779_s11 + $0x180] sm:$0xff] }
 0x96f   :  { %4071 = vmatprep.mubr.msk.f32.mxu0 %vm4232_vm0, %v4231_v21 }
 0x970   :  { %2021 = vst [vmem:[%s5780_s13 + $0x60] sm:$0xff] %v2005_v10  ;;  %v2008_v7 = vadd.f32 %v1992_v34, %v1976_v60  ;;  %v1975_v51 = vmax.f32 %v5420_v47, 0.0  ;;  %v2799_v47 = vld [vmem:[%s5779_s11 + $0x128] sm:$0xff] }
 0x971   :  { %v2817_v34 = vld [vmem:[%s5779_s11 + $0x1a8] sm:$0xff] }
 0x972   :  { %2024 = vst [vmem:[%s5780_s13 + $0x78] sm:$0xff] %v2008_v7  ;;  %v2007_v15 = vadd.f32 %v1991_v54, %v1975_v51  ;;  %4005 = vmatpush3.msra.mxu1 %v2008_v7  ;;  %v2815_v7 = vld [vmem:[%s5779_s11 + $0x198] sm:$0xff]  ;;  %v2814_v54 = vld [vmem:[%s5779_s11 + $0x190] sm:$0xff] }
 0x973   :  { %4006 = vmatprep.subr.mxu1 %v4231_v21 }
 0x974   :  { %2023 = vst [vmem:[%s5780_s13 + $0x70] sm:$0xff] %v2007_v15  ;;  %4007 = vmatpush3.msra.mxu1 %v2007_v15  ;;  %v2813_v15 = vld [vmem:[%s5779_s11 + $0x188] sm:$0xff] }
 0x975   :  { %4008 = vmatprep.subr.mxu1 %v4231_v21 }
 0x976   :  { %4009 = vmatpush3.msra.mxu1 %v2006_v29  ;;  %v2822_v29 = vld [vmem:[%s5779_s11 + $0x1d0] sm:$0xff] }
 0x977   :  { %4010 = vmatprep.subr.mxu1 %v4231_v21 }
 0x978   :  { %4011 = vmatpush3.msra.mxu1 %v2005_v10  ;;  %v2819_v10 = vld [vmem:[%s5779_s11 + $0x1b8] sm:$0xff] }
 0x979   :  { %4012 = vmatprep.subr.mxu1 %v4231_v21 }
 0x97a   :  { %4013 = vmatpush3.msra.mxu1 %v2004_v38  ;;  %v2825_v38 = vld [vmem:[%s5779_s11 + $0x1e8] sm:$0xff] }
 0x97b   :  { %4014 = vmatprep.subr.mxu1 %v4231_v21 }
 0x97c   :  { %4015 = vmatpush3.msra.mxu1 %v2003_v22  ;;  %v2824_v22 = vld [vmem:[%s5779_s11 + $0x1e0] sm:$0xff] }
 0x97d   :  { %4016 = vmatprep.subr.mxu1 %v4231_v21 }
 0x97e   :  { %4017 = vmatpush3.msra.mxu1 %v5335_v11  ;;  %v2794_v11 = vld [vmem:[%s5779_s11 + $0x100] sm:$0xff] }
 0x97f   :  { %4018 = vmatprep.subr.mxu1 %v4231_v21 }
 0x980   :  { %4019 = vmatpush3.msra.mxu1 %v5353_v25  ;;  %v2826_v25 = vld [vmem:[%s5779_s11 + $0x1f0] sm:$0xff] }
 0x981   :  { %4020 = vmatprep.subr.mxu1 %v4231_v21 }
 0x982   :  { %4021 = vmatpush3.msra.mxu1 %v5299_v28  ;;  %v2800_v28 = vld [vmem:[%s5779_s11 + $0x130] sm:$0xff] }
 0x983   :  { %4022 = vmatprep.subr.mxu1 %v4231_v21 }
 0x984   :  { %4023 = vmatpush3.msra.mxu1 %v5317_v63  ;;  %v2797_v63 = vld [vmem:[%s5779_s11 + $0x118] sm:$0xff] }
 0x985   :  { %4024 = vmatprep.subr.mxu1 %v4231_v21 }
 0x986   :  { %4025 = vmatpush3.msra.mxu1 %v5263_v4  ;;  %v2806_v4 = vld [vmem:[%s5779_s11 + $0x160] sm:$0xff] }
 0x987   :  { %4026 = vmatprep.subr.mxu1 %v4231_v21 }
 0x988   :  { %4027 = vmatpush3.msra.mxu1 %v5281_v12  ;;  %v2803_v12 = vld [vmem:[%s5779_s11 + $0x148] sm:$0xff] }
 0x989   :  { %4028 = vmatprep.subr.mxu1 %v4231_v21 }
 0x98a   :  { %4029 = vmatpush3.msra.mxu1 %v5227_v26  ;;  %v2778_v26 = vld [vmem:[%s5779_s11 + $0x90] sm:$0xff] }
 0x98b   :  { %4030 = vmatprep.subr.mxu1 %v4231_v21 }
 0x98c   :  { %4031 = vmatpush3.msra.mxu1 %v5245_v35  ;;  %v2776_v35 = vld [vmem:[%s5779_s11 + $0x80] sm:$0xff] }
 0x98d   :  { %4032 = vmatprep.subr.mxu1 %v4231_v21 }
 0x98e   :  { %4033 = vmatpush3.msra.mxu1 %v5191_v13  ;;  %v5794_v13 = vmax.f32 %v5251_v32, 0.0  ;;  %v2807_v32 = vld [vmem:[%s5779_s11 + $0x168] sm:$0xff] }
 0x98f   :  { %4034 = vmatprep.subr.mxu1 %v4231_v21 }
 0x990   :  { %4035 = vmatpush3.msra.mxu1 %v5209_v40  ;;  %v5795_v40 = vmax.f32 %v5197_v16, 0.0  ;;  %v2777_v16 = vld [vmem:[%s5779_s11 + $0x88] sm:$0xff] }
 0x991   :  { %4037 = vmatmul.mubr.f32.vlgmr.msra.gmra.mxu1 %v5162_v3  ;;  %4074 = vmatprep.subr.mxu1 %v4231_v21 }
 0x992   :  { %4075 = vmatpush3.msra.mxu1 %v4958_v19  ;;  %4106 = vmatprep.mubr.msk.f32.mxu1 %vm4232_vm0, %v4231_v21  ;;  %v2791_v19 = vld [vmem:[%s5779_s11 + $0xf8] sm:$0xff] }
 0x993   :  { %4076 = vmatprep.subr.mxu1 %v4231_v21  ;;  %4040 = vmatpush3.msra.mxu0 %v2791_v19 }
 0x994   :  { %4077 = vmatpush3.msra.mxu1 %v4960_v43  ;;  %v3968_v43 = vpop.f32.mrf.mxu1  ;;  %4041 = vmatprep.subr.mxu0 %v4231_v21 }
 0x995   :  { %4078 = vmatprep.subr.mxu1 %v4231_v21 }
 0x996   :  { %4079 = vmatpush3.msra.mxu1 %v4964_v41  ;;  %v2790_v41 = vld [vmem:[%s5779_s11 + $0xf0] sm:$0xff] }
 0x997   :  { %4080 = vmatprep.subr.mxu1 %v4231_v21  ;;  %4042 = vmatpush3.msra.mxu0 %v2790_v41 }
 0x998   :  { %4081 = vmatpush3.msra.mxu1 %v4968_v39  ;;  %v2789_v39 = vld [vmem:[%s5779_s11 + $0xe8] sm:$0xff]  ;;  %4043 = vmatprep.subr.mxu0 %v4231_v21 }
 0x999   :  { %4082 = vmatprep.subr.mxu1 %v4231_v21  ;;  %4044 = vmatpush3.msra.mxu0 %v2789_v39 }
 0x99a   :  { %4083 = vmatpush3.msra.mxu1 %v4972_v37  ;;  %v2788_v37 = vld [vmem:[%s5779_s11 + $0xe0] sm:$0xff]  ;;  %4045 = vmatprep.subr.mxu0 %v4231_v21 }
 0x99b   :  { %4084 = vmatprep.subr.mxu1 %v4231_v21  ;;  %4046 = vmatpush3.msra.mxu0 %v2788_v37 }
 0x99c   :  { %4085 = vmatpush3.msra.mxu1 %v4976_v18  ;;  %v2787_v18 = vld [vmem:[%s5779_s11 + $0xd8] sm:$0xff]  ;;  %4047 = vmatprep.subr.mxu0 %v4231_v21 }
 0x99d   :  { %4086 = vmatprep.subr.mxu1 %v4231_v21  ;;  %4048 = vmatpush3.msra.mxu0 %v2787_v18 }
 0x99e   :  { %4087 = vmatpush3.msra.mxu1 %v4980_v30  ;;  %v2786_v30 = vld [vmem:[%s5779_s11 + $0xd0] sm:$0xff]  ;;  %4049 = vmatprep.subr.mxu0 %v4231_v21 }
 0x99f   :  { %4088 = vmatprep.subr.mxu1 %v4231_v21  ;;  %4050 = vmatpush3.msra.mxu0 %v2786_v30  ;;  %v2775_v30 = vld [vmem:[%s5781_s12] ss:$0 sm:$0xff] }
 0x9a0   :  { %4089 = vmatpush3.msra.mxu1 %v4984_v31  ;;  %v2785_v31 = vld [vmem:[%s5779_s11 + $0xc8] sm:$0xff]  ;;  %4051 = vmatprep.subr.mxu0 %v4231_v21 }
 0x9a1   :  { %4090 = vmatprep.subr.mxu1 %v4231_v21  ;;  %4052 = vmatpush3.msra.mxu0 %v2785_v31 }
 0x9a2   :  { %4091 = vmatpush3.msra.mxu1 %v4988_v36  ;;  %v2784_v36 = vld [vmem:[%s5779_s11 + $0xc0] sm:$0xff]  ;;  %4053 = vmatprep.subr.mxu0 %v4231_v21 }
 0x9a3   :  { %4092 = vmatprep.subr.mxu1 %v4231_v21  ;;  %4054 = vmatpush3.msra.mxu0 %v2784_v36 }
 0x9a4   :  { %4093 = vmatpush3.msra.mxu1 %v4992_v49  ;;  %v2783_v49 = vld [vmem:[%s5779_s11 + $0xb8] sm:$0xff]  ;;  %4055 = vmatprep.subr.mxu0 %v4231_v21 }
 0x9a5   :  { %4094 = vmatprep.subr.mxu1 %v4231_v21  ;;  %4056 = vmatpush3.msra.mxu0 %v2783_v49  ;;  %v2793_v49 = vld [vmem:[%s5781_s12 + $0x1] ss:$0 sm:$0xff] }
 0x9a6   :  { %4095 = vmatpush3.msra.mxu1 %v4996_v55  ;;  %v5791_v55 = vmax.f32 %v5269_v8, 0.0  ;;  %4057 = vmatprep.subr.mxu0 %v4231_v21  ;;  %v2804_v8 = vld [vmem:[%s5779_s11 + $0x150] sm:$0xff] }
 0x9a7   :  { %4096 = vmatprep.subr.mxu1 %v4231_v21 }
 0x9a8   :  { %4097 = vmatpush3.msra.mxu1 %v5000_v57  ;;  %v2782_v57 = vld [vmem:[%s5779_s11 + $0xb0] sm:$0xff] }
 0x9a9   :  { %4098 = vmatprep.subr.mxu1 %v4231_v21  ;;  %4058 = vmatpush3.msra.mxu0 %v2782_v57  ;;  %v2811_v57 = vld [vmem:[%s5781_s12 + $0x2] ss:$0 sm:$0xff] }
 0x9aa   :  { %4099 = vmatpush3.msra.mxu1 %v5005_v59  ;;  %v5792_v59 = vmax.f32 %v5287_v44, 0.0  ;;  %4059 = vmatprep.subr.mxu0 %v4231_v21  ;;  %v2801_v44 = vld [vmem:[%s5779_s11 + $0x138] sm:$0xff] }
 0x9ab   :  { %4100 = vmatprep.subr.mxu1 %v4231_v21 }
 0x9ac   :  { %4101 = vmatpush3.msra.mxu1 %v5010_v61  ;;  %v2781_v61 = vld [vmem:[%s5779_s11 + $0xa8] sm:$0xff] }
 0x9ad   :  { %4102 = vmatprep.subr.mxu1 %v4231_v21  ;;  %4060 = vmatpush3.msra.mxu0 %v2781_v61 }
 0x9ae   :  { %4103 = vmatpush3.msra.mxu1 %v5014_v23  ;;  %v5793_v23 = vmax.f32 %v5233_v24, 0.0  ;;  %4061 = vmatprep.subr.mxu0 %v4231_v21  ;;  %v5797_v24 = vmax.f32 %v5175_v5, 0.0  ;;  %v2809_v5 = vld [vmem:[%s5779_s11 + $0x178] sm:$0xff] }
 0x9af   :  { %4104 = vmatprep.subr.mxu1 %v4231_v21 }
 0x9b0   :  { %4105 = vmatpush3.msra.mxu1 %v5018_v20  ;;  %v2780_v20 = vld [vmem:[%s5779_s11 + $0xa0] sm:$0xff] }
 0x9b1   :  { %4107 = vmatmul.mubr.f32.vlgmr.msra.gmra.mxu1 %v5162_v3  ;;  %4144 = vmatprep.subr.mxu1 %v4231_v21 }
 0x9b2   :  { %4145 = vmatpush3.msra.mxu1 %v1976_v60  ;;  %4176 = vmatprep.mubr.msk.f32.mxu1 %vm4232_vm0, %v4231_v21  ;;  %v2818_v60 = vld [vmem:[%s5779_s11 + $0x1b0] sm:$0xff] }
 0x9b3   :  { %4146 = vmatprep.subr.mxu1 %v4231_v21  ;;  %4062 = vmatpush3.msra.mxu0 %v2780_v20 }
 0x9b4   :  { %4147 = vmatpush3.msra.mxu1 %v1975_v51  ;;  %4063 = vmatprep.subr.mxu0 %v4231_v21  ;;  %v2802_v51 = vld [vmem:[%s5779_s11 + $0x140] sm:$0xff] }
 0x9b5   :  { %4148 = vmatprep.subr.mxu1 %v4231_v21  ;;  %4064 = vmatpush3.msra.mxu0 %v2779_v14 }
 0x9b6   :  { %4149 = vmatpush3.msra.mxu1 %v1974_v1  ;;  %4065 = vmatprep.subr.mxu0 %v4231_v21  ;;  %v2823_v1 = vld [vmem:[%s5779_s11 + $0x1d8] sm:$0xff] }
 0x9b7   :  { %4150 = vmatprep.subr.mxu1 %v4231_v21  ;;  %4066 = vmatpush3.msra.mxu0 %v2778_v26 }
 0x9b8   :  { %4151 = vmatpush3.msra.mxu1 %v1973_v58  ;;  %4067 = vmatprep.subr.mxu0 %v4231_v21  ;;  %v2821_v58 = vld [vmem:[%s5779_s11 + $0x1c8] sm:$0xff] }
 0x9b9   :  { %4152 = vmatprep.subr.mxu1 %v4231_v21  ;;  %4068 = vmatpush3.msra.mxu0 %v2777_v16 }
 0x9ba   :  { %4153 = vmatpush3.msra.mxu1 %v1972_v46  ;;  %4069 = vmatprep.subr.mxu0 %v4231_v21 }
 0x9bb   :  { %4154 = vmatprep.subr.mxu1 %v4231_v21  ;;  %4070 = vmatpush3.msra.mxu0 %v2776_v35 }
 0x9bc   :  { %4155 = vmatpush3.msra.mxu1 %v1971_v62  ;;  %4109 = vmatprep.subr.mxu0 %v4231_v21 }
 0x9bd   :  { %4156 = vmatprep.subr.mxu1 %v4231_v21 }
 0x9be   :  { %4157 = vmatpush3.msra.mxu1 %v1970_v48  ;;  %v2796_v48 = vld [vmem:[%s5779_s11 + $0x110] sm:$0xff] }
 0x9bf   :  { %4158 = vmatprep.subr.mxu1 %v4231_v21 }
 0x9c0   :  { %4159 = vmatpush3.msra.mxu1 %v1969_v45  ;;  %v2827_v45 = vld [vmem:[%s5779_s11 + $0x1f8] sm:$0xff] }
 0x9c1   :  { %4160 = vmatprep.subr.mxu1 %v4231_v21 }
 0x9c2   :  { %4161 = vmatpush3.msra.mxu1 %v5791_v55 }
 0x9c3   :  { %4162 = vmatprep.subr.mxu1 %v4231_v21 }
 0x9c4   :  { %4163 = vmatpush3.msra.mxu1 %v5792_v59 }
 0x9c5   :  { %4164 = vmatprep.subr.mxu1 %v4231_v21 }
 0x9c6   :  { %4165 = vmatpush3.msra.mxu1 %v5793_v23  ;;  %v2829_v23 = vld [vmem:[%s5781_s12 + $0x3] ss:$0 sm:$0xff] }
 0x9c7   :  { %4166 = vmatprep.subr.mxu1 %v4231_v21 }
 0x9c8   :  { %4167 = vmatpush3.msra.mxu1 %v5794_v13 }
 0x9c9   :  { %4168 = vmatprep.subr.mxu1 %v4231_v21 }
 0x9ca   :  { %4169 = vmatpush3.msra.mxu1 %v5795_v40 }
 0x9cb   :  { %4170 = vmatprep.subr.mxu1 %v4231_v21 }
 0x9cc   :  { %4171 = vmatpush3.msra.mxu1 %v5796_v52 }
 0x9cd   :  { %4172 = vmatprep.subr.mxu1 %v4231_v21 }
 0x9ce   :  { %4173 = vmatpush3.msra.mxu1 %v5797_v24 }
 0x9cf   :  { %4174 = vmatprep.subr.mxu1 %v4231_v21 }
 0x9d0   :  { %4175 = vmatpush3.msra.mxu1 %v5798_v33 }
 0x9d1   :  { %4177 = vmatmul.mubr.f32.vlgmr.msra.gmra.mxu1 %v5162_v3  ;;  %v2808_v3 = vld [vmem:[%s5779_s11 + $0x170] sm:$0xff] }
 0xa2e   :  { %v2185_v0 = vpop.f32.mrf.mxu0 }
 0xa2f   :  { %v2186_v31 = vadd.f32 %v2775_v30, %v2185_v0 }
 0xa30   :  { %v4003_v62 = vpop.f32.mrf.mxu0 }
 0xa51   :  { %v2255_v9 = vpop.f32.mrf.mxu1 }
 0xa52   :  { %4072 = vmatmul.mubr.f32.vlgmr.msra.gmra.mxu0 %v2255_v9 }
 0xa53   :  { %v4038_v53 = vpop.f32.mrf.mxu1  ;;  %4110 = vmatpush3.msra.mxu0 %v2809_v5  ;;  %4141 = vmatprep.mubr.msk.f32.mxu0 %vm4232_vm0, %v4231_v21 }
 0xa54   :  { %4111 = vmatprep.subr.mxu0 %v4231_v21 }
 0xa55   :  { %4112 = vmatpush3.msra.mxu0 %v2808_v3 }
 0xa56   :  { %4113 = vmatprep.subr.mxu0 %v4231_v21 }
 0xa57   :  { %4114 = vmatpush3.msra.mxu0 %v2807_v32 }
 0xa58   :  { %4115 = vmatprep.subr.mxu0 %v4231_v21 }
 0xa59   :  { %4116 = vmatpush3.msra.mxu0 %v2806_v4 }
 0xa5a   :  { %4117 = vmatprep.subr.mxu0 %v4231_v21 }
 0xa5b   :  { %4118 = vmatpush3.msra.mxu0 %v2805_v50 }
 0xa5c   :  { %4119 = vmatprep.subr.mxu0 %v4231_v21 }
 0xa5d   :  { %4120 = vmatpush3.msra.mxu0 %v2804_v8 }
 0xa5e   :  { %4121 = vmatprep.subr.mxu0 %v4231_v21 }
 0xa5f   :  { %4122 = vmatpush3.msra.mxu0 %v2803_v12 }
 0xa60   :  { %4123 = vmatprep.subr.mxu0 %v4231_v21 }
 0xa61   :  { %4124 = vmatpush3.msra.mxu0 %v2802_v51 }
 0xa62   :  { %4125 = vmatprep.subr.mxu0 %v4231_v21 }
 0xa63   :  { %4126 = vmatpush3.msra.mxu0 %v2801_v44 }
 0xa64   :  { %4127 = vmatprep.subr.mxu0 %v4231_v21 }
 0xa65   :  { %4128 = vmatpush3.msra.mxu0 %v2800_v28 }
 0xa66   :  { %4129 = vmatprep.subr.mxu0 %v4231_v21 }
 0xa67   :  { %4130 = vmatpush3.msra.mxu0 %v2799_v47 }
 0xa68   :  { %4131 = vmatprep.subr.mxu0 %v4231_v21 }
 0xa69   :  { %4132 = vmatpush3.msra.mxu0 %v2798_v27 }
 0xa6a   :  { %4133 = vmatprep.subr.mxu0 %v4231_v21 }
 0xa6b   :  { %4134 = vmatpush3.msra.mxu0 %v2797_v63 }
 0xa6c   :  { %4135 = vmatprep.subr.mxu0 %v4231_v21 }
 0xa6d   :  { %4136 = vmatpush3.msra.mxu0 %v2796_v48 }
 0xa6e   :  { %4137 = vmatprep.subr.mxu0 %v4231_v21 }
 0xa6f   :  { %4138 = vmatpush3.msra.mxu0 %v2795_v2 }
 0xa70   :  { %4139 = vmatprep.subr.mxu0 %v4231_v21 }
 0xa71   :  { %v2422_v42 = vpop.f32.mrf.mxu1  ;;  %4140 = vmatpush3.msra.mxu0 %v2794_v11 }
 0xa72   :  { %4142 = vmatmul.mubr.f32.vlgmr.msra.gmra.mxu0 %v2422_v42  ;;  %4179 = vmatprep.subr.mxu0 %v4231_v21 }
 0xa73   :  { %v4108_v46 = vpop.f32.mrf.mxu1  ;;  %4180 = vmatpush3.msra.mxu0 %v2827_v45  ;;  %4211 = vmatprep.mubr.msk.f32.mxu0 %vm4232_vm0, %v4231_v21 }
 0xa74   :  { %4181 = vmatprep.subr.mxu0 %v4231_v21 }
 0xa75   :  { %4182 = vmatpush3.msra.mxu0 %v2826_v25 }
 0xa76   :  { %4183 = vmatprep.subr.mxu0 %v4231_v21 }
 0xa77   :  { %4184 = vmatpush3.msra.mxu0 %v2825_v38 }
 0xa78   :  { %4185 = vmatprep.subr.mxu0 %v4231_v21 }
 0xa79   :  { %4186 = vmatpush3.msra.mxu0 %v2824_v22 }
 0xa7a   :  { %4187 = vmatprep.subr.mxu0 %v4231_v21 }
 0xa7b   :  { %4188 = vmatpush3.msra.mxu0 %v2823_v1 }
 0xa7c   :  { %4189 = vmatprep.subr.mxu0 %v4231_v21 }
 0xa7d   :  { %4190 = vmatpush3.msra.mxu0 %v2822_v29 }
 0xa7e   :  { %4191 = vmatprep.subr.mxu0 %v4231_v21 }
 0xa7f   :  { %4192 = vmatpush3.msra.mxu0 %v2821_v58 }
 0xa80   :  { %4193 = vmatprep.subr.mxu0 %v4231_v21 }
 0xa81   :  { %4194 = vmatpush3.msra.mxu0 %v2820_v17 }
 0xa82   :  { %4195 = vmatprep.subr.mxu0 %v4231_v21 }
 0xa83   :  { %4196 = vmatpush3.msra.mxu0 %v2819_v10 }
 0xa84   :  { %4197 = vmatprep.subr.mxu0 %v4231_v21 }
 0xa85   :  { %4198 = vmatpush3.msra.mxu0 %v2818_v60 }
 0xa86   :  { %4199 = vmatprep.subr.mxu0 %v4231_v21 }
 0xa87   :  { %4200 = vmatpush3.msra.mxu0 %v2817_v34 }
 0xa88   :  { %4201 = vmatprep.subr.mxu0 %v4231_v21 }
 0xa89   :  { %4202 = vmatpush3.msra.mxu0 %v2816_v6 }
 0xa8a   :  { %4203 = vmatprep.subr.mxu0 %v4231_v21 }
 0xa8b   :  { %4204 = vmatpush3.msra.mxu0 %v2815_v7 }
 0xa8c   :  { %4205 = vmatprep.subr.mxu0 %v4231_v21 }
 0xa8d   :  { %4206 = vmatpush3.msra.mxu0 %v2814_v54 }
 0xa8e   :  { %4207 = vmatprep.subr.mxu0 %v4231_v21 }
 0xa8f   :  { %4208 = vmatpush3.msra.mxu0 %v2813_v15 }
 0xa90   :  { %4209 = vmatprep.subr.mxu0 %v4231_v21 }
 0xa91   :  { %v2589_v19 = vpop.f32.mrf.mxu1  ;;  %4210 = vmatpush3.msra.mxu0 %v2812_v56 }
 0xa92   :  { %4212 = vmatmul.mubr.f32.vlgmr.msra.gmra.mxu0 %v2589_v19 }
 0xa93   :  { %v4178_v43 = vpop.f32.mrf.mxu1 }
 0xb12   :  { %v2342_v41 = vpop.f32.mrf.mxu0 }
 0xb13   :  { %v2346_v36 = vadd.f32 %v2342_v41, %v2186_v31 }
 0xb14   :  { %v4073_v39 = vpop.f32.mrf.mxu0 }
 0xb15   :  { %v2355_v55 = vadd.f32 %v2793_v49, %v2346_v36 }
 0xb32   :  { %v2509_v37 = vpop.f32.mrf.mxu0 }
 0xb33   :  { %v2513_v21 = vadd.f32 %v2509_v37, %v2355_v55 }
 0xb34   :  { %v4143_v18 = vpop.f32.mrf.mxu0 }
 0xb35   :  { %v2522_v59 = vadd.f32 %v2811_v57, %v2513_v21 }
 0xb52   :  { %v2676_v61 = vpop.f32.mrf.mxu0 }
 0xb53   :  { %v2680_v20 = vadd.f32 %v2676_v61, %v2522_v59 }
 0xb54   :  { %v4213_v13 = vpop.f32.mrf.mxu0 }
 0xb55   :  { %v2689_v14 = vadd.f32 %v2829_v23, %v2680_v20 }
 0xb57   :  { %2690 = vst [vmem:[%s5782_s14] sm:$0xff] %v2689_v14 }

</bundles_post_ra>
